<compile_context>
chip_gen: v7x
topology: tpu7x:2x2x1
jax: 0.10.0
libtpu: 0.0.40
codegen_flags: <defaults>
</compile_context>

<pallas_src>
import jax
import jax.numpy as jnp
from jax.experimental import pallas as pl
from jax.experimental.pallas import tpu as pltpu


def _round_up(x, m):
    return ((x + m - 1) // m) * m


def _link_pred_kernel(etype_ref, src_ref, dst_ref, w1s_ref, w1d_ref, b1_ref,
                      w2row_ref, b2lane_ref, ltype_ref, out_ref):
    """One tile of edges: two packed MXU dots + VPU select + lane reduce."""
    # First linear layer, packed over all edge types along the N axis.
    # bf16 inputs, f32 accumulation; the [E, 2D] concat is never built.
    h = jnp.dot(src_ref[...], w1s_ref[...], preferred_element_type=jnp.float32)
    h = h + jnp.dot(dst_ref[...], w1d_ref[...], preferred_element_type=jnp.float32)
    h = h + b1_ref[...]                         # [TE, TH_pad] f32, bias [1, TH_pad]
    h = jnp.maximum(h, 0.01 * h)                # LeakyReLU(negative_slope=0.01)

    # Second linear layer as a lane-masked reduce (no MXU pass, no bf16 cast):
    #   weighted[e, l] = h[e, l] * w2_flat[l] + b2_on_first_lane_of_block[l]
    #   score[e]       = sum over lanes l with lane_type[l] == etype[e]
    # Padding lanes carry lane_type == T (never matches); missing edge types
    # (etype == -1) match no lane -> score 0.
    weighted = h * w2row_ref[...] + b2lane_ref[...]          # [TE, TH_pad] f32
    mask = ltype_ref[...] == etype_ref[...]                  # [1,THp] vs [TE,1]
    out_ref[...] = jnp.sum(jnp.where(mask, weighted, 0.0),
                           axis=-1, keepdims=True)           # [TE, 1]


def pack_classifier_weights(w1, b1, w2, b2):
    """Pack per-edge-type MLP params for the kernel.

    w1: [T, 2D, H], b1: [T, H], w2: [T, H, 1], b2: [T, 1]
    Returns (w1_src [D, TH_pad] bf16, w1_dst [D, TH_pad] bf16,
             b1 [1, TH_pad] f32, w2_row [1, TH_pad] f32,
             b2_lane [1, TH_pad] f32, lane_type [1, TH_pad] i32).
    """
    T, two_d, H = w1.shape
    D = two_d // 2
    TH = T * H
    th_pad = _round_up(TH, 128)

    w1p = jnp.zeros((two_d, th_pad), jnp.float32)
    b1p = jnp.zeros((1, th_pad), jnp.float32)
    w2row = jnp.zeros((1, th_pad), jnp.float32)
    b2lane = jnp.zeros((1, th_pad), jnp.float32)
    lane_type = jnp.full((1, th_pad), T, jnp.int32)   # sentinel T on padding lanes
    for t in range(T):                                 # tiny host-side loop (T ~ 4)
        w1p = w1p.at[:, t * H:(t + 1) * H].set(w1[t])
        b1p = b1p.at[0, t * H:(t + 1) * H].set(b1[t])
        w2row = w2row.at[0, t * H:(t + 1) * H].set(w2[t, :, 0])
        b2lane = b2lane.at[0, t * H].set(b2[t, 0])     # b2 added once per type block
        lane_type = lane_type.at[0, t * H:(t + 1) * H].set(t)

    return (w1p[:D].astype(jnp.bfloat16),      # W1 half applied to src_emb
            w1p[D:].astype(jnp.bfloat16),      # W1 half applied to dst_emb
            b1p, w2row, b2lane, lane_type)


def link_prediction_scores(src_emb, dst_emb, edge_type_idx, packed, *, tile_e=2048):
    """Pallas call over tiles of edges. Returns scores of shape [E]."""
    w1s, w1d, b1p, w2row, b2lane, lane_type = packed
    E, D = src_emb.shape
    th_pad = w1s.shape[1]

    # Large tiles amortize the ~0.35us per-grid-step overhead, but keep >= 2
    # grid steps whenever possible so the "parallel" axis still splits across
    # v7x's two TensorCores.
    tile_e = max(256, min(tile_e, _round_up((E + 1) // 2, 256)))
    e_pad = _round_up(E, tile_e)
    if e_pad != E:
        pad = e_pad - E
        src_emb = jnp.pad(src_emb, ((0, pad), (0, 0)))
        dst_emb = jnp.pad(dst_emb, ((0, pad), (0, 0)))
        edge_type_idx = jnp.pad(edge_type_idx, (0, pad), constant_values=-1)

    src_bf = src_emb.astype(jnp.bfloat16)      # no-op if already bf16
    dst_bf = dst_emb.astype(jnp.bfloat16)
    etype2d = edge_type_idx.astype(jnp.int32)[:, None]        # [E_pad, 1]

    flops = 2 * e_pad * (2 * D) * th_pad + 8 * e_pad * th_pad
    bytes_accessed = (2 * e_pad * D * 2          # src + dst bf16 tiles
                      + e_pad * 4 + e_pad * 4    # etype in, scores out
                      + 2 * D * th_pad * 2 + 4 * th_pad * 4)
    cost = pl.CostEstimate(flops=int(flops), transcendentals=0,
                           bytes_accessed=int(bytes_accessed))

    out = pl.pallas_call(
        _link_pred_kernel,
        out_shape=jax.ShapeDtypeStruct((e_pad, 1), jnp.float32),
        grid_spec=pltpu.PrefetchScalarGridSpec(
            num_scalar_prefetch=0,
            grid=(e_pad // tile_e,),
            in_specs=[
                pl.BlockSpec((tile_e, 1), lambda i: (i, 0)),        # edge types
                pl.BlockSpec((tile_e, D), lambda i: (i, 0)),        # src embeddings
                pl.BlockSpec((tile_e, D), lambda i: (i, 0)),        # dst embeddings
                pl.BlockSpec((D, th_pad), lambda i: (0, 0)),        # W1 (src half)
                pl.BlockSpec((D, th_pad), lambda i: (0, 0)),        # W1 (dst half)
                pl.BlockSpec((1, th_pad), lambda i: (0, 0)),        # b1 packed
                pl.BlockSpec((1, th_pad), lambda i: (0, 0)),        # w2 row
                pl.BlockSpec((1, th_pad), lambda i: (0, 0)),        # b2 per-lane
                pl.BlockSpec((1, th_pad), lambda i: (0, 0)),        # lane -> type id
            ],
            out_specs=pl.BlockSpec((tile_e, 1), lambda i: (i, 0)),
        ),
        compiler_params=pltpu.CompilerParams(
            dimension_semantics=("parallel",),
            vmem_limit_bytes=32 * 1024 * 1024),
        cost_estimate=cost,
    )(etype2d, src_bf, dst_bf, w1s, w1d, b1p, w2row, b2lane, lane_type)
    return out[:E, 0]


def link_prediction_forward(rgcn_emb, edge_label_index, node_type_arr,
                            edge_type_lookup, packed_weights):
    """Mirrors LinkPrediction.forward. Returns (scores, rgcn_emb)."""
    src, dst = edge_label_index[0], edge_label_index[1]
    # Cast the (small) node table to bf16 once and gather bf16 rows: halves the
    # HBM traffic of the [E, D] gathered intermediates vs f32-gather + cast.
    emb_bf16 = rgcn_emb.astype(jnp.bfloat16)
    src_emb = emb_bf16[src]                   # row gather left to XLA (glue)
    dst_emb = emb_bf16[dst]
    # dict lookups (node_type_map, left_right_to_edge_type) as dense int tables
    src_types = node_type_arr[src]
    dst_types = node_type_arr[dst]
    edge_type_idx = edge_type_lookup[src_types, dst_types]    # -1 for unknown pairs
    scores = link_prediction_scores(src_emb, dst_emb, edge_type_idx, packed_weights)
    return scores, rgcn_emb


def _reference_scores(src_emb, dst_emb, edge_type_idx, w1, b1, w2, b2):
    """Pure-JAX reference (bf16 inputs / f32-accumulate layer 1, f32 layer 2)."""
    x = jnp.concatenate([src_emb, dst_emb], axis=-1).astype(jnp.bfloat16)
    h = jnp.einsum('ed,tdh->teh', x, w1.astype(jnp.bfloat16),
                   preferred_element_type=jnp.float32) + b1[:, None, :]
    h = jnp.maximum(h, 0.01 * h)
    s = jnp.einsum('teh,tho->teo', h, w2,
                   preferred_element_type=jnp.float32) + b2[:, None, :]
    s = s[..., 0]                                             # [T, E]
    T = w1.shape[0]
    sel = edge_type_idx[None, :] == jnp.arange(T)[:, None]
    return jnp.sum(jnp.where(sel, s, 0.0), axis=0)


if __name__ == "__main__":
    key = jax.random.PRNGKey(0)

    # small, module-consistent shapes
    num_nodes = 32
    embedding_dim = 128         # D (module default)
    hidden_dim = 24             # H (module default)
    num_node_types = 2
    # left_right_to_edge_type = {(0,0):0, (0,1):1, (1,0):2, (1,1):3}
    num_edge_types = 4          # T
    num_edges = 1000            # E (non-multiple of tile -> padding; grid has 2 steps)

    k_emb, k_src, k_dst, k_nt, kw1, kb1, kw2, kb2 = jax.random.split(key, 8)

    rgcn_emb = jax.random.normal(k_emb, (num_nodes, embedding_dim), jnp.float32)
    src = jax.random.randint(k_src, (num_edges,), 0, num_nodes)
    dst = jax.random.randint(k_dst, (num_edges,), 0, num_nodes)
    edge_label_index = jnp.stack([src, dst], axis=0)          # [2, E]

    # node_type_map: node id -> node type; left_right_to_edge_type as dense table
    node_type_arr = jax.random.randint(k_nt, (num_nodes,), 0, num_node_types)
    edge_type_lookup = jnp.array([[0, 1], [2, 3]], dtype=jnp.int32)

    # per-edge-type classifier params: Linear(2D, H) -> LeakyReLU -> Linear(H, 1)
    two_d = 2 * embedding_dim
    w1 = 0.05 * jax.random.normal(kw1, (num_edge_types, two_d, hidden_dim), jnp.float32)
    b1 = 0.05 * jax.random.normal(kb1, (num_edge_types, hidden_dim), jnp.float32)
    w2 = 0.05 * jax.random.normal(kw2, (num_edge_types, hidden_dim, 1), jnp.float32)
    b2 = 0.05 * jax.random.normal(kb2, (num_edge_types, 1), jnp.float32)

    packed = pack_classifier_weights(w1, b1, w2, b2)

    scores, emb_out = link_prediction_forward(
        rgcn_emb, edge_label_index, node_type_arr, edge_type_lookup, packed)
    scores = jax.block_until_ready(scores)

    # verify against a pure-JAX reference with matching numerics
    src_emb = rgcn_emb[src]
    dst_emb = rgcn_emb[dst]
    edge_type_idx = edge_type_lookup[node_type_arr[src], node_type_arr[dst]]
    ref = _reference_scores(src_emb, dst_emb, edge_type_idx, w1, b1, w2, b2)

    assert scores.shape == (num_edges,)
    assert bool(jnp.all(jnp.isfinite(scores)))
    assert jnp.allclose(scores, ref, atol=5e-3, rtol=1e-2), (
        float(jnp.max(jnp.abs(scores - ref))))
    assert emb_out.shape == rgcn_emb.shape

    print("KERNEL_OK")
</pallas_src>

<mosaic_0001>
module attributes {stable_mosaic.version = 11 : i64} {
  func.func @_link_pred_kernel(%arg0: i32, %arg1: memref<512x1xi32, #tpu.memory_space<vmem>>, %arg2: memref<512x128xbf16, #tpu.memory_space<vmem>>, %arg3: memref<512x128xbf16, #tpu.memory_space<vmem>>, %arg4: memref<128x128xbf16, #tpu.memory_space<vmem>>, %arg5: memref<128x128xbf16, #tpu.memory_space<vmem>>, %arg6: memref<1x128xf32, #tpu.memory_space<vmem>>, %arg7: memref<1x128xf32, #tpu.memory_space<vmem>>, %arg8: memref<1x128xf32, #tpu.memory_space<vmem>>, %arg9: memref<1x128xi32, #tpu.memory_space<vmem>>, %arg10: memref<512x1xf32, #tpu.memory_space<vmem>>) attributes {dimension_semantics = [#tpu.dimension_semantics<parallel>], iteration_bounds = array<i64: 2>, scalar_prefetch = 0 : i64, scratch_operands = 0 : i64, tpu.core_type = #tpu.core_type<tc>, window_params = [{transform_indices = @transform_0, window_bounds = array<i64: 512, 1>}, {transform_indices = @transform_1, window_bounds = array<i64: 512, 128>}, {transform_indices = @transform_2, window_bounds = array<i64: 512, 128>}, {pipeline_mode = #tpu.pipeline_mode<synchronous>, transform_indices = @transform_3, window_bounds = array<i64: 128, 128>}, {pipeline_mode = #tpu.pipeline_mode<synchronous>, transform_indices = @transform_4, window_bounds = array<i64: 128, 128>}, {pipeline_mode = #tpu.pipeline_mode<synchronous>, transform_indices = @transform_5, window_bounds = array<i64: 1, 128>}, {pipeline_mode = #tpu.pipeline_mode<synchronous>, transform_indices = @transform_6, window_bounds = array<i64: 1, 128>}, {pipeline_mode = #tpu.pipeline_mode<synchronous>, transform_indices = @transform_7, window_bounds = array<i64: 1, 128>}, {pipeline_mode = #tpu.pipeline_mode<synchronous>, transform_indices = @transform_8, window_bounds = array<i64: 1, 128>}, {transform_indices = @transform_9, window_bounds = array<i64: 512, 1>}]} {
    %c0 = arith.constant 0 : index
    %c0_0 = arith.constant 0 : index
    %0 = vector.load %arg2[%c0, %c0_0] : memref<512x128xbf16, #tpu.memory_space<vmem>>, vector<512x128xbf16>
    %c0_1 = arith.constant 0 : index
    %c0_2 = arith.constant 0 : index
    %1 = vector.load %arg4[%c0_1, %c0_2] : memref<128x128xbf16, #tpu.memory_space<vmem>>, vector<128x128xbf16>
    %cst = arith.constant dense<0.000000e+00> : vector<512x128xf32>
    %2 = tpu.matmul %0, %1, %cst {dimension_numbers = #tpu.dot_dimension_numbers<[1], [0], [0], [1], [0, 0, 1, 1], [], []>} : vector<512x128xbf16>, vector<128x128xbf16>, vector<512x128xf32> -> vector<512x128xf32>
    %c0_3 = arith.constant 0 : index
    %c0_4 = arith.constant 0 : index
    %3 = vector.load %arg3[%c0_3, %c0_4] : memref<512x128xbf16, #tpu.memory_space<vmem>>, vector<512x128xbf16>
    %c0_5 = arith.constant 0 : index
    %c0_6 = arith.constant 0 : index
    %4 = vector.load %arg5[%c0_5, %c0_6] : memref<128x128xbf16, #tpu.memory_space<vmem>>, vector<128x128xbf16>
    %cst_7 = arith.constant dense<0.000000e+00> : vector<512x128xf32>
    %5 = tpu.matmul %3, %4, %cst_7 {dimension_numbers = #tpu.dot_dimension_numbers<[1], [0], [0], [1], [0, 0, 1, 1], [], []>} : vector<512x128xbf16>, vector<128x128xbf16>, vector<512x128xf32> -> vector<512x128xf32>
    %6 = arith.addf %2, %5 : vector<512x128xf32>
    %c0_8 = arith.constant 0 : index
    %c0_9 = arith.constant 0 : index
    %7 = vector.load %arg6[%c0_8, %c0_9] : memref<1x128xf32, #tpu.memory_space<vmem>>, vector<1x128xf32>
    %8 = vector.broadcast %7 : vector<1x128xf32> to vector<512x128xf32>
    %9 = arith.addf %6, %8 : vector<512x128xf32>
    %cst_10 = arith.constant 0.00999999977 : f32
    %10 = vector.broadcast %cst_10 : f32 to vector<512x128xf32>
    %11 = arith.mulf %10, %9 : vector<512x128xf32>
    %12 = arith.maximumf %9, %11 : vector<512x128xf32>
    %c0_11 = arith.constant 0 : index
    %c0_12 = arith.constant 0 : index
    %13 = vector.load %arg7[%c0_11, %c0_12] : memref<1x128xf32, #tpu.memory_space<vmem>>, vector<1x128xf32>
    %14 = vector.broadcast %13 : vector<1x128xf32> to vector<512x128xf32>
    %15 = arith.mulf %12, %14 : vector<512x128xf32>
    %c0_13 = arith.constant 0 : index
    %c0_14 = arith.constant 0 : index
    %16 = vector.load %arg8[%c0_13, %c0_14] : memref<1x128xf32, #tpu.memory_space<vmem>>, vector<1x128xf32>
    %17 = vector.broadcast %16 : vector<1x128xf32> to vector<512x128xf32>
    %18 = arith.addf %15, %17 : vector<512x128xf32>
    %c0_15 = arith.constant 0 : index
    %c0_16 = arith.constant 0 : index
    %19 = vector.load %arg9[%c0_15, %c0_16] : memref<1x128xi32, #tpu.memory_space<vmem>>, vector<1x128xi32>
    %c0_17 = arith.constant 0 : index
    %c0_18 = arith.constant 0 : index
    %20 = vector.load %arg1[%c0_17, %c0_18] : memref<512x1xi32, #tpu.memory_space<vmem>>, vector<512x1xi32>
    %21 = vector.broadcast %19 : vector<1x128xi32> to vector<512x128xi32>
    %22 = vector.broadcast %20 : vector<512x1xi32> to vector<512x128xi32>
    %23 = arith.cmpi eq, %21, %22 : vector<512x128xi32>
    %cst_19 = arith.constant 0.000000e+00 : f32
    %24 = vector.broadcast %cst_19 : f32 to vector<512x128xf32>
    %25 = arith.select %23, %18, %24 : vector<512x128xi1>, vector<512x128xf32>
    %cst_20 = arith.constant dense<0.000000e+00> : vector<512xf32>
    %26 = vector.multi_reduction <add>, %25, %cst_20 [1] : vector<512x128xf32> to vector<512xf32>
    %27 = vector.shape_cast %26 : vector<512xf32> to vector<512x1xf32>
    %c0_21 = arith.constant 0 : index
    %c0_22 = arith.constant 0 : index
    %28 = vector.load %arg10[%c0_21, %c0_22] : memref<512x1xf32, #tpu.memory_space<vmem>>, vector<512x1xf32>
    tpu.vector_store %arg10[%c0_21, %c0_22], %27 {strides = array<i32>} : memref<512x1xf32, #tpu.memory_space<vmem>>, vector<512x1xf32>,
    return
  }
  func.func @transform_0(%arg0: i32) -> (i32, i32) {
    %c0_i32 = arith.constant 0 : i32
    %c0_i32_0 = arith.constant 0 : i32
    return %arg0, %c0_i32 : i32, i32
  }
  func.func @transform_1(%arg0: i32) -> (i32, i32) {
    %c0_i32 = arith.constant 0 : i32
    %c0_i32_0 = arith.constant 0 : i32
    return %arg0, %c0_i32 : i32, i32
  }
  func.func @transform_2(%arg0: i32) -> (i32, i32) {
    %c0_i32 = arith.constant 0 : i32
    %c0_i32_0 = arith.constant 0 : i32
    return %arg0, %c0_i32 : i32, i32
  }
  func.func @transform_3(%arg0: i32) -> (i32, i32) {
    %c0_i32 = arith.constant 0 : i32
    %c0_i32_0 = arith.constant 0 : i32
    %c0_i32_1 = arith.constant 0 : i32
    return %c0_i32, %c0_i32_0 : i32, i32
  }
  func.func @transform_4(%arg0: i32) -> (i32, i32) {
    %c0_i32 = arith.constant 0 : i32
    %c0_i32_0 = arith.constant 0 : i32
    %c0_i32_1 = arith.constant 0 : i32
    return %c0_i32, %c0_i32_0 : i32, i32
  }
  func.func @transform_5(%arg0: i32) -> (i32, i32) {
    %c0_i32 = arith.constant 0 : i32
    %c0_i32_0 = arith.constant 0 : i32
    %c0_i32_1 = arith.constant 0 : i32
    return %c0_i32, %c0_i32_0 : i32, i32
  }
  func.func @transform_6(%arg0: i32) -> (i32, i32) {
    %c0_i32 = arith.constant 0 : i32
    %c0_i32_0 = arith.constant 0 : i32
    %c0_i32_1 = arith.constant 0 : i32
    return %c0_i32, %c0_i32_0 : i32, i32
  }
  func.func @transform_7(%arg0: i32) -> (i32, i32) {
    %c0_i32 = arith.constant 0 : i32
    %c0_i32_0 = arith.constant 0 : i32
    %c0_i32_1 = arith.constant 0 : i32
    return %c0_i32, %c0_i32_0 : i32, i32
  }
  func.func @transform_8(%arg0: i32) -> (i32, i32) {
    %c0_i32 = arith.constant 0 : i32
    %c0_i32_0 = arith.constant 0 : i32
    %c0_i32_1 = arith.constant 0 : i32
    return %c0_i32, %c0_i32_0 : i32, i32
  }
  func.func @transform_9(%arg0: i32) -> (i32, i32) {
    %c0_i32 = arith.constant 0 : i32
    %c0_i32_0 = arith.constant 0 : i32
    return %arg0, %c0_i32 : i32, i32
  }
}

</mosaic_0001>

<bundles_post_ra>
// kernel: tpu_custom_call.1
= control target key start
LH: loop header
LB: loop body
LE: loop exit
PB: predicated region body
PF: predicated region fallthrough
CT: control target
= control target key end

     0   :  { %14 = vsyncpa [#allocation3], 0  ;;  %s4242_s0 = inlined_call_operand.vmem [shape: s32[1024,1], index: 0, kind: input, shape index: {}]   ;;  %s4243_s1 = inlined_call_operand.vmem [shape: bf16[1024,128], index: 1, kind: input, shape index: {}]   ;;  %s4244_s2 = inlined_call_operand.vmem [shape: bf16[1024,128], index: 2, kind: input, shape index: {}]   ;;  %s4245_s3 = inlined_call_operand.hbm [shape: bf16[128,128], index: 3, kind: input, shape index: {}]   ;;  %s4246_s4 = inlined_call_operand.hbm [shape: bf16[128,128], index: 4, kind: input, shape index: {}]   ;;  %s4247_s5 = inlined_call_operand.vmem [shape: f32[1,128], index: 5, kind: input, shape index: {}]   ;;  %s4248_s6 = inlined_call_operand.vmem [shape: f32[1,128], index: 6, kind: input, shape index: {}]   ;;  %s4249_s7 = inlined_call_operand.vmem [shape: f32[1,128], index: 7, kind: input, shape index: {}]   ;;  %s4250_s8 = inlined_call_operand.vmem [shape: s32[1,128], index: 8, kind: input, shape index: {}]   ;;  %s4251_s9 = inlined_call_operand.vmem [shape: f32[1024,1], index: 9, kind: output, shape index: {}]  }
   0x1   :  { %15 = vsyncpa [#allocation5], 0  ;;  %s3306_s30 = smov 0  }
   0x2 LB: > { %s2654_s10 = sadd.s32 4294967295, %s3249_s30   ;;  %p2656_p0 = scmp.ge.s32.totalorder %s3249_s30, 1  ;;  %s3249_s30 = sphi %s3306_s30, %s21_s30  }
   0x3   : > { %p256_p1 = scmp.lt.s32.totalorder %s3249_s30, 3  ;;  %s3251_s11 = smov [#allocation2]  }
   0x4   : > { %s268_s12 = sshll.u32 %s3251_s11, 4  ;;  %p3320_p3 = scmp.eq.s32.totalorder %s2654_s10, 0  ;;  %s269_s12 = int_to_ptr.vmem [resolvable:$true] %s268_s12 }
   0x5   : > { %p3314_p2 = pnand %p2656_p0, %p256_p1  ;;  %s3252_s15 = smov [#allocation4]  }
   0x6   : > { %s4256_s14 = scalar_select %p3320_p3, 1, 0 }
   0x7   : > { %s4255_s13 = scalar_select %p3314_p2, 1, 0 }
   0x8   : > { %p3069_p4 = pneg %p3314_p2  ;;  %s281_s16 = sshll.u32 %s3252_s15, 4  ;;  %s3332_s16 = int_to_ptr.vmem [resolvable:$true] %s281_s16 }
   0x9   : > { %s3179_s20 = scalar_lea.hbm %s4245_s3, 1024 }
   0xa   : > { %p3328_p5 = pnand %p3320_p3, %p3069_p4  ;;  %p3180_p6 = scmp.ne.s32.totalorder %s4245_s3, %s3179_s20 }
   0xb   : > { %p3186_p10 = scmp.lt.u32.totalorder %s3179_s20, %s4245_s3 }
   0xc   : > { %p3181_p7 = pneg %p3328_p5 }
   0xe   : > { %p3182_p8 = pnand %p3181_p7, %p3180_p6 }
  0x10   : > { %p3183_p9 = pneg %p3182_p8 }
  0x12   : > { %p3188_p11 = pnand %p3186_p10, %p3183_p9 }
  0x14   : > { %3191 = shalt.err (!%p3188_p11)
}
  0x15   : > { %s3192_s25 = scalar_lea.vmem %s269_s12, 1024  ;;  %p3200_p1 = scmp.lt.s32.totalorder %s269_s12, %s269_s12 }
  0x16   : > { %p3193_p12 = scmp.ne.s32.totalorder %s269_s12, %s3192_s25  ;;  %p3201_p4 = scmp.lt.s32.totalorder %s3192_s25, %s3192_s25 }
  0x18   : > { %p3195_p13 = pnand %p3193_p12, %p3181_p7  ;;  %p3202_p3 = por %p3201_p4, %p3200_p1 }
  0x1a   : > { %p3196_p0 = pneg %p3195_p13 }
  0x1c   : > { %p3203_p2 = pnand %p3202_p3, %p3196_p0 }
  0x1e   : > { %3206 = shalt.err (!%p3203_p2)
}
  0x1f   : > { %s3253_s26 = smov 64   ;;  %s3254_s27 = smov 4  }
  0x20   : > { %3072 = dma.hbm_to_vmem [thread:$0]  (!%p3328_p5), %s4245_s3, 1024, %s269_s12, [#allocation3], %s3253_s26, %s3253_s26, %s3254_s27  }
  0x21   : > { %s3207_s18 = scalar_lea.hbm %s4246_s4, 1024 }
  0x22   : > { %p3208_p6 = scmp.ne.s32.totalorder %s4246_s4, %s3207_s18  ;;  %p3214_p8 = scmp.lt.u32.totalorder %s3207_s18, %s4246_s4 }
  0x24   : > { %p3210_p2 = pnand %p3208_p6, %p3181_p7 }
  0x26   : > { %p3211_p3 = pneg %p3210_p2 }
  0x28   : > { %p3216_p9 = pnand %p3214_p8, %p3211_p3 }
  0x2a   : > { %3219 = shalt.err (!%p3216_p9)
}
  0x2b   : > { %s3220_s12 = scalar_lea.vmem %s3332_s16, 1024  ;;  %p3228_p13 = scmp.lt.s32.totalorder %s3332_s16, %s3332_s16 }
  0x2c   : > { %p3221_p10 = scmp.ne.s32.totalorder %s3332_s16, %s3220_s12  ;;  %p3229_p0 = scmp.lt.s32.totalorder %s3220_s12, %s3220_s12 }
  0x2e   : > { %p3223_p11 = pnand %p3221_p10, %p3181_p7  ;;  %p3230_p1 = por %p3229_p0, %p3228_p13 }
  0x30   : > { %p3224_p12 = pneg %p3223_p11 }
  0x32   : > { %p3231_p4 = pnand %p3230_p1, %p3224_p12 }
  0x34   : > { %3234 = shalt.err (!%p3231_p4)
}
  0x35   : > { %3075 = dma.hbm_to_vmem [thread:$0]  (!%p3328_p5), %s4246_s4, 1024, %s3332_s16, [#allocation5], %s3253_s26, %s3253_s26, %s3254_s27  }
  0x36   : > { %p4258_p6 = scmp.ne.s32.totalorder %s4255_s13, 0 }
  0x37   : > { %p4259_p2 = scmp.ne.s32.totalorder (!%p4258_p6), %s4256_s14, 0 }
  0x38   : > { %336 = sbr.rel (%p4258_p6) target bundleno = 598 (0x256), region = 56 }
  0x3f   : > { %3240 = dma.done.wait (%p4259_p2), [#allocation3], 1024  }
  0x40   : > { %3242 = vsyncadd (%p4259_p2), [#allocation3], 4294966272 }
  0x41   : > { %3244 = dma.done.wait (%p4259_p2), [#allocation5], 1024  }
  0x42   : > { %3246 = vsyncadd (%p4259_p2), [#allocation5], 4294966272  ;;  %s2663_s17 = sshll.u32 %s2654_s10, 6  ;;  %v3255_v0 = vmov 0   ;;  %v3095_v3 = vld [vmem:[#allocation4] sm:$0xff]   ;;  %v3097_v7 = vld [vmem:[#allocation4 + $0x8] sm:$0xff]  }
  0x43   : > { %3094 = vset.pattern.permute.xlu1 %v3255_v0  ;;  %3093 = vset.pattern.permute.xlu0 %v3255_v0  ;;  %p387_p5 = scmp.lt.s32.totalorder %s2663_s17, 127  ;;  %v3096_v4 = vld [vmem:[#allocation2] sm:$0xff]   ;;  %v3098_v8 = vld [vmem:[#allocation2 + $0x8] sm:$0xff]   ;;  %v3099_v11 = vld [vmem:[#allocation4 + $0x10] sm:$0xff]  }
  0x44   : > { %2837 = vmatprep.subr.bf16.mxu1 %v3095_v3  ;;  %2917 = vmatprep.subr.bf16.mxu0 %v3096_v4  ;;  %v3100_v12 = vld [vmem:[#allocation2 + $0x10] sm:$0xff]   ;;  %v3101_v15 = vld [vmem:[#allocation4 + $0x18] sm:$0xff]   ;;  %v3103_v19 = vld [vmem:[#allocation4 + $0x20] sm:$0xff]  }
  0x45   : > { %s4261_s17 = smov (!%p387_p5, %s2663_s17), 127  ;;  %2838 = vmatpush3.bf16.msra.mxu1 %v3095_v3  ;;  %2918 = vmatpush3.bf16.msra.mxu0 %v3096_v4  ;;  %v3102_v16 = vld [vmem:[#allocation2 + $0x18] sm:$0xff]   ;;  %v3104_v20 = vld [vmem:[#allocation2 + $0x20] sm:$0xff]   ;;  %v3105_v23 = vld [vmem:[#allocation4 + $0x28] sm:$0xff]  }
  0x46   : > { %s2664_s13 = sshll.u32 %s4261_s17, 3  ;;  %2839 = vmatprep.subr.bf16.mxu1 %v3097_v7  ;;  %2919 = vmatprep.subr.bf16.mxu0 %v3098_v8  ;;  %s2666_s10 = sshll.u32 %s4261_s17, 2  ;;  %v3106_v24 = vld [vmem:[#allocation2 + $0x28] sm:$0xff]   ;;  %v3107_v27 = vld [vmem:[#allocation4 + $0x30] sm:$0xff]   ;;  %v3109_v33 = vld [vmem:[#allocation4 + $0x38] sm:$0xff]  }
  0x47   : > { %s3401_s26 = scalar_lea.vmem %s4242_s0, %s2664_s13  ;;  %s3419_s28 = scalar_lea.vmem %s4244_s2, %s2666_s10  ;;  %v3108_v28 = vld [vmem:[#allocation2 + $0x30] sm:$0xff]   ;;  %v3110_v34 = vld [vmem:[#allocation2 + $0x38] sm:$0xff]  }
  0x48   : > { %v1973_v1 = vld [vmem:[%s3401_s26 + $0x10] sm:$0xff]  ;;  %v1971_v2 = vld [vmem:[%s3401_s26] sm:$0xff]  ;;  %v1974_v5 = vld [vmem:[%s3401_s26 + $0x18] sm:$0xff]  ;;  %s3425_s15 = scalar_lea.vmem %s4243_s1, %s2666_s10  ;;  %s4109_s18 = scalar_lea.vmem %s4251_s9, %s2664_s13 }
  0x49   : > { %2046 = vperm.xlu1 %3094, %v1973_v1   ;;  %2040 = vperm.xlu0 %3093, %v1971_v2   ;;  %v1972_v6 = vld [vmem:[%s3401_s26 + $0x8] sm:$0xff]  ;;  %v1975_v10 = vld [vmem:[%s3401_s26 + $0x20] sm:$0xff]  ;;  %v1978_v13 = vld [vmem:[%s3401_s26 + $0x38] sm:$0xff] }
  0x4a   : > { %v1976_v9 = vld [vmem:[%s3401_s26 + $0x28] sm:$0xff]  ;;  %2840 = vmatpush3.bf16.msra.mxu1 %v3097_v7  ;;  %2920 = vmatpush3.bf16.msra.mxu0 %v3098_v8  ;;  %v1977_v14 = vld [vmem:[%s3401_s26 + $0x30] sm:$0xff]  ;;  %v1979_v18 = vld [vmem:[%s3401_s26 + $0x40] sm:$0xff] }
  0x4b   : > { %2841 = vmatprep.subr.bf16.mxu1 %v3099_v11  ;;  %2921 = vmatprep.subr.bf16.mxu0 %v3100_v12  ;;  %v1980_v17 = vld [vmem:[%s3401_s26 + $0x48] sm:$0xff]  ;;  %v1982_v21 = vld [vmem:[%s3401_s26 + $0x58] sm:$0xff]  ;;  %v1981_v22 = vld [vmem:[%s3401_s26 + $0x50] sm:$0xff] }
  0x4c   : > { %v1984_v25 = vld [vmem:[%s3401_s26 + $0x68] sm:$0xff]  ;;  %v1983_v26 = vld [vmem:[%s3401_s26 + $0x60] sm:$0xff]  ;;  %v1986_v31 = vld [vmem:[%s3401_s26 + $0x78] sm:$0xff] }
  0x4d   : > { %2049 = vperm.xlu1 %3094, %v1974_v5   ;;  %2043 = vperm.xlu0 %3093, %v1972_v6   ;;  %v3111_v29 = vld [vmem:[%s3419_s28] sm:$0xff]   ;;  %v1985_v32 = vld [vmem:[%s3401_s26 + $0x70] sm:$0xff]  ;;  %v1988_v35 = vld [vmem:[%s3401_s26 + $0x88] sm:$0xff] }
  0x4e   : > { %2842 = vmatpush3.bf16.msra.mxu1 %v3099_v11  ;;  %2922 = vmatpush3.bf16.msra.mxu0 %v3100_v12  ;;  %v3112_v30 = vld [vmem:[%s3425_s15] sm:$0xff]   ;;  %v3113_v37 = vld [vmem:[%s3419_s28 + $0x8] sm:$0xff]   ;;  %v3115_v39 = vld [vmem:[%s3419_s28 + $0x10] sm:$0xff]  }
  0x4f   : > { %2843 = vmatprep.subr.bf16.mxu1 %v3101_v15  ;;  %2923 = vmatprep.subr.bf16.mxu0 %v3102_v16  ;;  %v1987_v36 = vld [vmem:[%s3401_s26 + $0x80] sm:$0xff]  ;;  %v3114_v38 = vld [vmem:[%s3425_s15 + $0x8] sm:$0xff]   ;;  %v3116_v40 = vld [vmem:[%s3425_s15 + $0x10] sm:$0xff]  }
  0x50   : > { %2853 = vmatprep.mubr.bf16.mxu1 %v3111_v29  ;;  %2933 = vmatprep.mubr.bf16.mxu0 %v3112_v30  ;;  %v1990_v41 = vld [vmem:[%s3401_s26 + $0x98] sm:$0xff]  ;;  %v1989_v42 = vld [vmem:[%s3401_s26 + $0x90] sm:$0xff]  ;;  %v1992_v43 = vld [vmem:[%s3401_s26 + $0xa8] sm:$0xff] }
  0x51   : > { %2055 = vperm.xlu1 %3094, %v1976_v9   ;;  %2052 = vperm.xlu0 %3093, %v1975_v10   ;;  %v1991_v44 = vld [vmem:[%s3401_s26 + $0xa0] sm:$0xff]  ;;  %v3117_v45 = vld [vmem:[%s3419_s28 + $0x18] sm:$0xff]   ;;  %v1993_v50 = vld [vmem:[%s3401_s26 + $0xb0] sm:$0xff] }
  0x52   : > { %2844 = vmatpush3.bf16.msra.mxu1 %v3101_v15  ;;  %2924 = vmatpush3.bf16.msra.mxu0 %v3102_v16  ;;  %v3118_v46 = vld [vmem:[%s3425_s15 + $0x18] sm:$0xff]   ;;  %v3119_v47 = vld [vmem:[%s3419_s28 + $0x20] sm:$0xff]   ;;  %v1996_v51 = vld [vmem:[%s3401_s26 + $0xc8] sm:$0xff] }
  0x53   : > { %2845 = vmatprep.subr.bf16.mxu1 %v3103_v19  ;;  %2925 = vmatprep.subr.bf16.mxu0 %v3104_v20  ;;  %v3120_v48 = vld [vmem:[%s3425_s15 + $0x20] sm:$0xff]   ;;  %v1994_v49 = vld [vmem:[%s3401_s26 + $0xb8] sm:$0xff]  ;;  %v3121_v53 = vld [vmem:[%s3419_s28 + $0x28] sm:$0xff]  }
  0x54   : > { %v1995_v52 = vld [vmem:[%s3401_s26 + $0xc0] sm:$0xff]  ;;  %v3122_v54 = vld [vmem:[%s3425_s15 + $0x28] sm:$0xff]   ;;  %v3123_v55 = vld [vmem:[%s3419_s28 + $0x30] sm:$0xff]  }
  0x55   : > { %2061 = vperm.xlu1 %3094, %v1978_v13   ;;  %2058 = vperm.xlu0 %3093, %v1977_v14   ;;  %v3124_v56 = vld [vmem:[%s3425_s15 + $0x30] sm:$0xff]   ;;  %v1998_v57 = vld [vmem:[%s3401_s26 + $0xd8] sm:$0xff]  ;;  %v2000_v59 = vld [vmem:[%s3401_s26 + $0xe8] sm:$0xff] }
  0x56   : > { %2846 = vmatpush3.bf16.msra.mxu1 %v3103_v19  ;;  %2926 = vmatpush3.bf16.msra.mxu0 %v3104_v20  ;;  %v1997_v58 = vld [vmem:[%s3401_s26 + $0xd0] sm:$0xff]  ;;  %v1999_v60 = vld [vmem:[%s3401_s26 + $0xe0] sm:$0xff]  ;;  %v3125_v61 = vld [vmem:[%s3419_s28 + $0x38] sm:$0xff]  }
  0x57   : > { %2847 = vmatprep.subr.bf16.mxu1 %v3105_v23  ;;  %2927 = vmatprep.subr.bf16.mxu0 %v3106_v24  ;;  %v3126_v62 = vld [vmem:[%s3425_s15 + $0x38] sm:$0xff]   ;;  %v3127_v63 = vld [vmem:[%s3419_s28 + $0x40] sm:$0xff]   ;;  %v2001_v2 = vld [vmem:[%s3401_s26 + $0xf0] sm:$0xff] }
  0x58   : > { %v3128_v0 = vld [vmem:[%s3425_s15 + $0x40] sm:$0xff]   ;;  %v2002_v1 = vld [vmem:[%s3401_s26 + $0xf8] sm:$0xff]  ;;  %v2004_v3 = vld [vmem:[%s3401_s26 + $0x108] sm:$0xff] }
  0x59   : > { %2067 = vperm.xlu1 %3094, %v1980_v17   ;;  %2064 = vperm.xlu0 %3093, %v1979_v18   ;;  %v2003_v4 = vld [vmem:[%s3401_s26 + $0x100] sm:$0xff]  ;;  %v3129_v5 = vld [vmem:[%s3419_s28 + $0x48] sm:$0xff]   ;;  %v3131_v7 = vld [vmem:[%s3419_s28 + $0x50] sm:$0xff]  }
  0x5a   : > { %2848 = vmatpush3.bf16.msra.mxu1 %v3105_v23  ;;  %2928 = vmatpush3.bf16.msra.mxu0 %v3106_v24  ;;  %v3130_v6 = vld [vmem:[%s3425_s15 + $0x48] sm:$0xff]   ;;  %v3132_v8 = vld [vmem:[%s3425_s15 + $0x50] sm:$0xff]   ;;  %v2006_v9 = vld [vmem:[%s3401_s26 + $0x118] sm:$0xff] }
  0x5b   : > { %2849 = vmatprep.subr.bf16.mxu1 %v3107_v27  ;;  %2929 = vmatprep.subr.bf16.mxu0 %v3108_v28  ;;  %v2005_v10 = vld [vmem:[%s3401_s26 + $0x110] sm:$0xff]  ;;  %v2008_v11 = vld [vmem:[%s3401_s26 + $0x128] sm:$0xff]  ;;  %v2007_v12 = vld [vmem:[%s3401_s26 + $0x120] sm:$0xff] }
  0x5c   : > { %v3133_v13 = vld [vmem:[%s3419_s28 + $0x58] sm:$0xff]   ;;  %v3135_v15 = vld [vmem:[%s3419_s28 + $0x60] sm:$0xff]   ;;  %v2009_v18 = vld [vmem:[%s3401_s26 + $0x130] sm:$0xff] }
  0x5d   : > { %2073 = vperm.xlu1 %3094, %v1982_v21   ;;  %2070 = vperm.xlu0 %3093, %v1981_v22   ;;  %v3134_v14 = vld [vmem:[%s3425_s15 + $0x58] sm:$0xff]   ;;  %v3136_v16 = vld [vmem:[%s3425_s15 + $0x60] sm:$0xff]   ;;  %v2012_v19 = vld [vmem:[%s3401_s26 + $0x148] sm:$0xff] }
  0x5e   : > { %2850 = vmatpush3.bf16.msra.mxu1 %v3107_v27  ;;  %2930 = vmatpush3.bf16.msra.mxu0 %v3108_v28  ;;  %v2010_v17 = vld [vmem:[%s3401_s26 + $0x138] sm:$0xff]  ;;  %v2011_v20 = vld [vmem:[%s3401_s26 + $0x140] sm:$0xff]  ;;  %v3137_v21 = vld [vmem:[%s3419_s28 + $0x68] sm:$0xff]  }
  0x5f   : > { %2851 = vmatprep.subr.bf16.mxu1 %v3109_v33  ;;  %2931 = vmatprep.subr.bf16.mxu0 %v3110_v34  ;;  %v3138_v22 = vld [vmem:[%s3425_s15 + $0x68] sm:$0xff]   ;;  %v3139_v23 = vld [vmem:[%s3419_s28 + $0x70] sm:$0xff]   ;;  %v2015_v28 = vld [vmem:[%s3401_s26 + $0x160] sm:$0xff] }
  0x60   : > { %v3140_v24 = vld [vmem:[%s3425_s15 + $0x70] sm:$0xff]   ;;  %v2016_v27 = vld [vmem:[%s3401_s26 + $0x168] sm:$0xff]  ;;  %v3141_v29 = vld [vmem:[%s3419_s28 + $0x78] sm:$0xff]  }
  0x61   : > { %2079 = vperm.xlu1 %3094, %v1984_v25   ;;  %2076 = vperm.xlu0 %3093, %v1983_v26   ;;  %v2014_v25 = vld [vmem:[%s3401_s26 + $0x158] sm:$0xff]  ;;  %v2013_v26 = vld [vmem:[%s3401_s26 + $0x150] sm:$0xff] }
  0x62   : > { %2852 = vmatpush3.bf16.msra.mxu1 %v3109_v33  ;;  %2932 = vmatpush3.bf16.msra.mxu0 %v3110_v34  ;;  %v3142_v30 = vld [vmem:[%s3425_s15 + $0x78] sm:$0xff]   ;;  %v2017_v34 = vld [vmem:[%s3401_s26 + $0x170] sm:$0xff] }
  0x63   : > { %v2018_v33 = vld [vmem:[%s3401_s26 + $0x178] sm:$0xff] }
  0x65   : > { %2085 = vperm.xlu1 %3094, %v1986_v31   ;;  %2082 = vperm.xlu0 %3093, %v1985_v32   ;;  %v3143_v31 = vld [vmem:[%s3419_s28 + $0x80] sm:$0xff]  }
  0x66   : > { %2854 = vmatmul.mubr.bf16.vlgmr.msra.gmra.mrb[0].mxu1 %v3113_v37  ;;  %2934 = vmatmul.mubr.bf16.vlgmr.msra.gmra.mrb[0].mxu0 %v3114_v38  ;;  %v3144_v32 = vld [vmem:[%s3425_s15 + $0x80] sm:$0xff]   ;;  %v3145_v37 = vld [vmem:[%s3419_s28 + $0x88] sm:$0xff]  }
  0x67   : > { %2857 = vmatprep.mubr.bf16.mxu1 %v3115_v39  ;;  %2937 = vmatprep.mubr.bf16.mxu0 %v3116_v40  ;;  %v3146_v38 = vld [vmem:[%s3425_s15 + $0x88] sm:$0xff]   ;;  %v3147_v39 = vld [vmem:[%s3419_s28 + $0x90] sm:$0xff]  }
  0x68   : > { %v3148_v40 = vld [vmem:[%s3425_s15 + $0x90] sm:$0xff]  }
  0x69   : > { %2091 = vperm.xlu1 %3094, %v1988_v35   ;;  %2088 = vperm.xlu0 %3093, %v1987_v36   ;;  %v2020_v35 = vld [vmem:[%s3401_s26 + $0x188] sm:$0xff]  ;;  %v2019_v36 = vld [vmem:[%s3401_s26 + $0x180] sm:$0xff] }
  0x6d   : > { %2097 = vperm.xlu1 %3094, %v1990_v41   ;;  %2094 = vperm.xlu0 %3093, %v1989_v42   ;;  %v2022_v41 = vld [vmem:[%s3401_s26 + $0x198] sm:$0xff]  ;;  %v2021_v42 = vld [vmem:[%s3401_s26 + $0x190] sm:$0xff] }
  0x6e   : > { %2858 = vmatmul.mubr.bf16.gmra.mrb[4].mxu1 %v3117_v45  ;;  %2938 = vmatmul.mubr.bf16.gmra.mrb[4].mxu0 %v3118_v46  ;;  %v3149_v45 = vld [vmem:[%s3419_s28 + $0x98] sm:$0xff]  }
  0x6f   : > { %2861 = vmatprep.mubr.bf16.mxu1 %v3119_v47  ;;  %2941 = vmatprep.mubr.bf16.mxu0 %v3120_v48  ;;  %v3150_v46 = vld [vmem:[%s3425_s15 + $0x98] sm:$0xff]   ;;  %v3151_v47 = vld [vmem:[%s3419_s28 + $0xa0] sm:$0xff]  }
  0x70   : > { %v3152_v48 = vld [vmem:[%s3425_s15 + $0xa0] sm:$0xff]  }
  0x71   : > { %2103 = vperm.xlu1 %3094, %v1992_v43   ;;  %2100 = vperm.xlu0 %3093, %v1991_v44   ;;  %v2024_v43 = vld [vmem:[%s3401_s26 + $0x1a8] sm:$0xff]  ;;  %v2023_v44 = vld [vmem:[%s3401_s26 + $0x1a0] sm:$0xff] }
  0x75   : > { %2109 = vperm.xlu1 %3094, %v1994_v49   ;;  %2106 = vperm.xlu0 %3093, %v1993_v50   ;;  %v2026_v49 = vld [vmem:[%s3401_s26 + $0x1b8] sm:$0xff]  ;;  %v2025_v50 = vld [vmem:[%s3401_s26 + $0x1b0] sm:$0xff] }
  0x76   : > { %2862 = vmatmul.mubr.bf16.gmra.mrb[8].mxu1 %v3121_v53  ;;  %2942 = vmatmul.mubr.bf16.gmra.mrb[8].mxu0 %v3122_v54  ;;  %v3153_v53 = vld [vmem:[%s3419_s28 + $0xa8] sm:$0xff]  }
  0x77   : > { %2865 = vmatprep.mubr.bf16.mxu1 %v3123_v55  ;;  %2945 = vmatprep.mubr.bf16.mxu0 %v3124_v56  ;;  %v3154_v54 = vld [vmem:[%s3425_s15 + $0xa8] sm:$0xff]   ;;  %v3155_v55 = vld [vmem:[%s3419_s28 + $0xb0] sm:$0xff]  }
  0x78   : > { %v3156_v56 = vld [vmem:[%s3425_s15 + $0xb0] sm:$0xff]  }
  0x79   : > { %2115 = vperm.xlu1 %3094, %v1996_v51   ;;  %2112 = vperm.xlu0 %3093, %v1995_v52   ;;  %v2028_v51 = vld [vmem:[%s3401_s26 + $0x1c8] sm:$0xff]  ;;  %v2027_v52 = vld [vmem:[%s3401_s26 + $0x1c0] sm:$0xff] }
  0x7d   : > { %2121 = vperm.xlu1 %3094, %v1998_v57   ;;  %2118 = vperm.xlu0 %3093, %v1997_v58   ;;  %v2030_v57 = vld [vmem:[%s3401_s26 + $0x1d8] sm:$0xff]  ;;  %v2029_v58 = vld [vmem:[%s3401_s26 + $0x1d0] sm:$0xff] }
  0x7e   : > { %2866 = vmatmul.mubr.bf16.gmra.mrb[12].mxu1 %v3125_v61  ;;  %2946 = vmatmul.mubr.bf16.gmra.mrb[12].mxu0 %v3126_v62  ;;  %v3157_v61 = vld [vmem:[%s3419_s28 + $0xb8] sm:$0xff]  }
  0x7f   : > { %2869 = vmatprep.mubr.bf16.mxu1 %v3127_v63  ;;  %2949 = vmatprep.mubr.bf16.mxu0 %v3128_v0  ;;  %v3158_v62 = vld [vmem:[%s3425_s15 + $0xb8] sm:$0xff]   ;;  %v3159_v63 = vld [vmem:[%s3419_s28 + $0xc0] sm:$0xff]  }
  0x80   : > { %v3160_v0 = vld [vmem:[%s3425_s15 + $0xc0] sm:$0xff]  }
  0x81   : > { %2127 = vperm.xlu1 %3094, %v2000_v59   ;;  %2124 = vperm.xlu0 %3093, %v1999_v60   ;;  %v2032_v59 = vld [vmem:[%s3401_s26 + $0x1e8] sm:$0xff]  ;;  %v2031_v60 = vld [vmem:[%s3401_s26 + $0x1e0] sm:$0xff] }
  0x85   : > { %2133 = vperm.xlu1 %3094, %v2002_v1   ;;  %2130 = vperm.xlu0 %3093, %v2001_v2   ;;  %v2034_v1 = vld [vmem:[%s3401_s26 + $0x1f8] sm:$0xff]  ;;  %v2033_v2 = vld [vmem:[%s3401_s26 + $0x1f0] sm:$0xff] }
  0x86   : > { %2870 = vmatmul.mubr.bf16.gmra.mrb[16].mxu1 %v3129_v5  ;;  %2950 = vmatmul.mubr.bf16.gmra.mrb[16].mxu0 %v3130_v6  ;;  %v3163_v5 = vld [vmem:[%s3419_s28 + $0xd0] sm:$0xff]  }
  0x87   : > { %2873 = vmatprep.mubr.bf16.mxu1 %v3131_v7  ;;  %2953 = vmatprep.mubr.bf16.mxu0 %v3132_v8  ;;  %v3164_v6 = vld [vmem:[%s3425_s15 + $0xd0] sm:$0xff]   ;;  %v3165_v7 = vld [vmem:[%s3419_s28 + $0xd8] sm:$0xff]  }
  0x88   : > { %v3166_v8 = vld [vmem:[%s3425_s15 + $0xd8] sm:$0xff]  }
  0x89   : > { %2139 = vperm.xlu1 %3094, %v2004_v3   ;;  %2136 = vperm.xlu0 %3093, %v2003_v4   ;;  %v3161_v3 = vld [vmem:[%s3419_s28 + $0xc8] sm:$0xff]  }
  0x8a   : > { %v3162_v4 = vld [vmem:[%s3425_s15 + $0xc8] sm:$0xff]  }
  0x8d   : > { %2145 = vperm.xlu1 %3094, %v2006_v9   ;;  %2142 = vperm.xlu0 %3093, %v2005_v10   ;;  %v3167_v9 = vld [vmem:[%s3419_s28 + $0xe0] sm:$0xff]  }
  0x8e   : > { %2874 = vmatmul.mubr.bf16.gmra.mrb[20].mxu1 %v3133_v13  ;;  %2954 = vmatmul.mubr.bf16.gmra.mrb[20].mxu0 %v3134_v14  ;;  %v3168_v10 = vld [vmem:[%s3425_s15 + $0xe0] sm:$0xff]   ;;  %v3171_v13 = vld [vmem:[%s3419_s28 + $0xf0] sm:$0xff]  }
  0x8f   : > { %2877 = vmatprep.mubr.bf16.mxu1 %v3135_v15  ;;  %2957 = vmatprep.mubr.bf16.mxu0 %v3136_v16  ;;  %v3172_v14 = vld [vmem:[%s3425_s15 + $0xf0] sm:$0xff]   ;;  %v3173_v15 = vld [vmem:[%s3419_s28 + $0xf8] sm:$0xff]  }
  0x90   : > { %v3174_v16 = vld [vmem:[%s3425_s15 + $0xf8] sm:$0xff]  }
  0x91   : > { %2151 = vperm.xlu1 %3094, %v2008_v11   ;;  %2148 = vperm.xlu0 %3093, %v2007_v12   ;;  %v3169_v11 = vld [vmem:[%s3419_s28 + $0xe8] sm:$0xff]  }
  0x92   : > { %v3170_v12 = vld [vmem:[%s3425_s15 + $0xe8] sm:$0xff]  }
  0x95   : > { %2157 = vperm.xlu1 %3094, %v2010_v17   ;;  %2154 = vperm.xlu0 %3093, %v2009_v18  }
  0x96   : > { %2878 = vmatmul.mubr.bf16.gmra.mrb[24].mxu1 %v3137_v21  ;;  %2958 = vmatmul.mubr.bf16.gmra.mrb[24].mxu0 %v3138_v22 }
  0x97   : > { %2881 = vmatprep.mubr.bf16.mxu1 %v3139_v23  ;;  %2961 = vmatprep.mubr.bf16.mxu0 %v3140_v24 }
  0x99   : > { %2163 = vperm.xlu1 %3094, %v2012_v19   ;;  %2160 = vperm.xlu0 %3093, %v2011_v20  }
  0x9d   : > { %2169 = vperm.xlu1 %3094, %v2014_v25   ;;  %2166 = vperm.xlu0 %3093, %v2013_v26  }
  0x9e   : > { %2882 = vmatmul.mubr.bf16.gmra.mrb[28].mxu1 %v3141_v29  ;;  %2962 = vmatmul.mubr.bf16.gmra.mrb[28].mxu0 %v3142_v30 }
  0x9f   : > { %2885 = vmatprep.mubr.bf16.mxu1 %v3143_v31  ;;  %2965 = vmatprep.mubr.bf16.mxu0 %v3144_v32 }
  0xa1   : > { %2175 = vperm.xlu1 %3094, %v2016_v27   ;;  %2172 = vperm.xlu0 %3093, %v2015_v28  }
  0xa5   : > { %2181 = vperm.xlu1 %3094, %v2018_v33   ;;  %2178 = vperm.xlu0 %3093, %v2017_v34  }
  0xa6   : > { %2886 = vmatmul.mubr.bf16.gmra.mrb[32].mxu1 %v3145_v37  ;;  %2966 = vmatmul.mubr.bf16.gmra.mrb[32].mxu0 %v3146_v38 }
  0xa7   : > { %2889 = vmatprep.mubr.bf16.mxu1 %v3147_v39  ;;  %2969 = vmatprep.mubr.bf16.mxu0 %v3148_v40 }
  0xa9   : > { %2187 = vperm.xlu1 %3094, %v2020_v35   ;;  %2184 = vperm.xlu0 %3093, %v2019_v36  }
  0xad   : > { %2193 = vperm.xlu1 %3094, %v2022_v41   ;;  %2190 = vperm.xlu0 %3093, %v2021_v42  }
  0xae   : > { %2890 = vmatmul.mubr.bf16.gmra.mrb[36].mxu1 %v3149_v45  ;;  %2970 = vmatmul.mubr.bf16.gmra.mrb[36].mxu0 %v3150_v46 }
  0xaf   : > { %2893 = vmatprep.mubr.bf16.mxu1 %v3151_v47  ;;  %2973 = vmatprep.mubr.bf16.mxu0 %v3152_v48  ;;  %v3601_v47 = vld [vmem:[%s4247_s5] ss:$0 sm:$0xff] }
  0xb1   : > { %2199 = vperm.xlu1 %3094, %v2024_v43   ;;  %2196 = vperm.xlu0 %3093, %v2023_v44  }
  0xb5   : > { %2205 = vperm.xlu1 %3094, %v2026_v49   ;;  %2202 = vperm.xlu0 %3093, %v2025_v50  }
  0xb6   : > { %2894 = vmatmul.mubr.bf16.gmra.mrb[40].mxu1 %v3153_v53  ;;  %2974 = vmatmul.mubr.bf16.gmra.mrb[40].mxu0 %v3154_v54 }
  0xb7   : > { %2897 = vmatprep.mubr.bf16.mxu1 %v3155_v55  ;;  %2977 = vmatprep.mubr.bf16.mxu0 %v3156_v56 }
  0xb9   : > { %2211 = vperm.xlu1 %3094, %v2028_v51   ;;  %2208 = vperm.xlu0 %3093, %v2027_v52  }
  0xbd   : > { %2217 = vperm.xlu1 %3094, %v2030_v57   ;;  %2214 = vperm.xlu0 %3093, %v2029_v58  }
  0xbe   : > { %2898 = vmatmul.mubr.bf16.gmra.mrb[44].mxu1 %v3157_v61  ;;  %2978 = vmatmul.mubr.bf16.gmra.mrb[44].mxu0 %v3158_v62 }
  0xbf   : > { %2901 = vmatprep.mubr.bf16.mxu1 %v3159_v63  ;;  %2981 = vmatprep.mubr.bf16.mxu0 %v3160_v0 }
  0xc1   : > { %2223 = vperm.xlu1 %3094, %v2032_v59   ;;  %2220 = vperm.xlu0 %3093, %v2031_v60  }
  0xc5   : > { %2229 = vperm.xlu1 %3094, %v2034_v1   ;;  %2226 = vperm.xlu0 %3093, %v2033_v2   ;;  %v3613_v1 = vld [vmem:[%s4248_s6] ss:$0 sm:$0xff] }
  0xc6   : > { %2902 = vmatmul.mubr.bf16.gmra.mrb[48].mxu1 %v3161_v3  ;;  %2982 = vmatmul.mubr.bf16.gmra.mrb[48].mxu0 %v3162_v4  ;;  %v3618_v2 = vld [vmem:[%s4250_s8] ss:$0 sm:$0xff] }
  0xc7   : > { %2905 = vmatprep.mubr.bf16.mxu1 %v3163_v5  ;;  %2985 = vmatprep.mubr.bf16.mxu0 %v3164_v6 }
  0xc8   : > { %v3542_v17 = vpop.permute.xlu0 %2040  ;;  %v3544_v18 = vpop.permute.xlu1 %2046 }
  0xc9   : > { %vm2233_vm0 = vcmp.eq.s32.totalorder %v3618_v2, %v3544_v18  ;;  %vm2231_vm1 = vcmp.eq.s32.totalorder %v3618_v2, %v3542_v17 }
  0xcc   : > { %v3546_v19 = vpop.permute.xlu0 %2043  ;;  %v3548_v20 = vpop.permute.xlu1 %2049 }
  0xcd   : > { %vm2234_vm2 = vcmp.eq.s32.totalorder %v3618_v2, %v3548_v20  ;;  %vm2232_vm3 = vcmp.eq.s32.totalorder %v3618_v2, %v3546_v19 }
  0xce   : > { %2906 = vmatmul.mubr.bf16.gmra.mrb[52].mxu1 %v3165_v7  ;;  %2986 = vmatmul.mubr.bf16.gmra.mrb[52].mxu0 %v3166_v8 }
  0xcf   : > { %2909 = vmatprep.mubr.bf16.mxu1 %v3167_v9  ;;  %2989 = vmatprep.mubr.bf16.mxu0 %v3168_v10 }
  0xd0   : > { %v3550_v21 = vpop.permute.xlu0 %2052  ;;  %v3552_v22 = vpop.permute.xlu1 %2055 }
  0xd1   : > { %vm2236_vm5 = vcmp.eq.s32.totalorder %v3618_v2, %v3552_v22  ;;  %vm2235_vm6 = vcmp.eq.s32.totalorder %v3618_v2, %v3550_v21 }
  0xd4   : > { %v3554_v23 = vpop.permute.xlu0 %2058  ;;  %v3556_v24 = vpop.permute.xlu1 %2061 }
  0xd5   : > { %vm2237_vm4 = vcmp.eq.s32.totalorder %v3618_v2, %v3554_v23  ;;  %vm2238_vm7 = vcmp.eq.s32.totalorder %v3618_v2, %v3556_v24 }
  0xd6   : > { %2910 = vmatmul.mubr.bf16.gmra.mrb[56].mxu1 %v3169_v11  ;;  %2990 = vmatmul.mubr.bf16.gmra.mrb[56].mxu0 %v3170_v12  ;;  %v3626_v11 = vld [vmem:[%s4249_s7] ss:$0 sm:$0xff] }
  0xd7   : > { %2913 = vmatprep.mubr.bf16.mxu1 %v3171_v13  ;;  %2993 = vmatprep.mubr.bf16.mxu0 %v3172_v14 }
  0xd8   : > { %v3558_v25 = vpop.permute.xlu0 %2064  ;;  %v3560_v26 = vpop.permute.xlu1 %2067 }
  0xd9   : > { %vm2240_vm9 = vcmp.eq.s32.totalorder %v3618_v2, %v3560_v26  ;;  %vm2239_vm10 = vcmp.eq.s32.totalorder %v3618_v2, %v3558_v25 }
  0xdc   : > { %v3562_v27 = vpop.permute.xlu0 %2070  ;;  %v3564_v28 = vpop.permute.xlu1 %2073 }
  0xdd   : > { %vm2241_vm8 = vcmp.eq.s32.totalorder %v3618_v2, %v3562_v27  ;;  %vm2242_vm11 = vcmp.eq.s32.totalorder %v3618_v2, %v3564_v28 }
  0xde   : > { %2914 = vmatmul.mubr.bf16.gmra.mrb[60].mxu1 %v3173_v15  ;;  %2994 = vmatmul.mubr.bf16.gmra.mrb[60].mxu0 %v3174_v16 }
  0xe0   : > { %v3566_v29 = vpop.permute.xlu0 %2076  ;;  %v3568_v30 = vpop.permute.xlu1 %2079 }
  0xe1   : > { %vm2244_vm13 = vcmp.eq.s32.totalorder %v3618_v2, %v3568_v30  ;;  %vm2243_vm14 = vcmp.eq.s32.totalorder %v3618_v2, %v3566_v29 }
  0xe4   : > { %v3570_v31 = vpop.permute.xlu0 %2082  ;;  %v3572_v32 = vpop.permute.xlu1 %2085 }
  0xe5   : > { %vm2245_vm12 = vcmp.eq.s32.totalorder %v3618_v2, %v3570_v31  ;;  %vm2246_vm15 = vcmp.eq.s32.totalorder %v3618_v2, %v3572_v32 }
  0xe8   : > { %v3574_v33 = vpop.permute.xlu0 %2088  ;;  %v3576_v34 = vpop.permute.xlu1 %2091 }
  0xec   : > { %v3578_v35 = vpop.permute.xlu0 %2094  ;;  %v3580_v36 = vpop.permute.xlu1 %2097 }
  0xf0   : > { %v3582_v37 = vpop.permute.xlu0 %2100  ;;  %v3584_v38 = vpop.permute.xlu1 %2103 }
  0xf4   : > { %v3586_v39 = vpop.permute.xlu0 %2106  ;;  %v3588_v40 = vpop.permute.xlu1 %2109 }
  0xf8   : > { %v3590_v41 = vpop.permute.xlu0 %2112  ;;  %v3592_v42 = vpop.permute.xlu1 %2115 }
  0xfc   : > { %v3594_v43 = vpop.permute.xlu0 %2118  ;;  %v3596_v44 = vpop.permute.xlu1 %2121 }
 0x100   : > { %v3603_v49 = vpop.permute.xlu0 %2124  ;;  %v3607_v62 = vpop.permute.xlu1 %2127 }
 0x104   : > { %v3620_v3 = vpop.permute.xlu0 %2130 }
 0x139   : > { %v2855_v45 = vpop.f32.mrb[0].mxu1  ;;  %v2935_v46 = vpop.f32.mrb[0].mxu0 }
 0x13a   : > { %v845_v48 = vpop.f32.mrb[1].mxu1  ;;  %v1383_v50 = vadd.f32 %v2935_v46, %v2855_v45  ;;  %v1374_v51 = vpop.f32.mrb[1].mxu0 }
 0x13b   : > { %v1375_v52 = vadd.f32 %v1374_v51, %v845_v48  ;;  %v2856_v53 = vpop.f32.mrb[2].mxu1  ;;  %v2936_v55 = vpop.f32.mrb[2].mxu0 }
 0x13c   : > { %v1638_v54 = vadd.f32 %v3601_v47, %v1383_v50  ;;  %v848_v56 = vpop.f32.mrb[3].mxu1  ;;  %v1386_v58 = vadd.f32 %v2936_v55, %v2856_v53  ;;  %v1377_v59 = vpop.f32.mrb[3].mxu0 }
 0x13d   : > { %v1636_v57 = vadd.f32 %v3601_v47, %v1375_v52  ;;  %v1378_v61 = vadd.f32 %v1377_v59, %v848_v56 }
 0x13e   : > { %v1702_v60 = vmul.f32 0.01, %v1638_v54  ;;  %v1639_v0 = vadd.f32 %v3601_v47, %v1386_v58 }
 0x13f   : > { %v1700_v63 = vmul.f32 0.01, %v1636_v57  ;;  %v1637_v5 = vadd.f32 %v3601_v47, %v1378_v61 }
 0x140   : > { %v1766_v4 = vmax.f32 %v1638_v54, %v1702_v60  ;;  %v1703_v8 = vmul.f32 0.01, %v1639_v0 }
 0x141   : > { %v2859_v6 = vpop.f32.mrb[4].mxu1  ;;  %v1764_v7 = vmax.f32 %v1636_v57, %v1700_v63  ;;  %v2939_v9 = vpop.f32.mrb[4].mxu0  ;;  %v1701_v12 = vmul.f32 0.01, %v1637_v5 }
 0x142   : > { %v861_v10 = vpop.f32.mrb[5].mxu1  ;;  %v1399_v13 = vadd.f32 %v2939_v9, %v2859_v6  ;;  %v1390_v14 = vpop.f32.mrb[5].mxu0  ;;  %v1837_v16 = vmul.f32 %v3613_v1, %v1766_v4  ;;  %v1767_v45 = vmax.f32 %v1639_v0, %v1703_v8 }
 0x143   : > { %v2860_v15 = vpop.f32.mrb[6].mxu1  ;;  %v1391_v46 = vadd.f32 %v1390_v14, %v861_v10  ;;  %v2940_v48 = vpop.f32.mrb[6].mxu0  ;;  %v1835_v51 = vmul.f32 %v3613_v1, %v1764_v7  ;;  %v1765_v52 = vmax.f32 %v1637_v5, %v1701_v12 }
 0x144   : > { %v864_v50 = vpop.f32.mrb[7].mxu1  ;;  %v1642_v53 = vadd.f32 %v3601_v47, %v1399_v13  ;;  %v1402_v54 = vadd.f32 %v2940_v48, %v2860_v15  ;;  %v1393_v55 = vpop.f32.mrb[7].mxu0  ;;  %v1908_v56 = vadd.f32 %v3626_v11, %v1837_v16  ;;  %v1838_v60 = vmul.f32 %v3613_v1, %v1767_v45 }
 0x145   : > { %v1640_v57 = vadd.f32 %v3601_v47, %v1391_v46  ;;  %v1394_v58 = vadd.f32 %v1393_v55, %v864_v50  ;;  %v1906_v59 = vadd.f32 %v3626_v11, %v1835_v51  ;;  %v1836_v4 = vmul.f32 %v3613_v1, %v1765_v52  ;;  %v3644_v5 = vpop.permute.xlu1 %2133  ;;  %v3650_v9 = vpop.permute.xlu0 %2136 }
 0x146   : > { %v1706_v61 = vmul.f32 0.01, %v1642_v53  ;;  %v1643_v63 = vadd.f32 %v3601_v47, %v1402_v54  ;;  %v2297_v0 = vsel %vm2233_vm0, %v1908_v56, 0.0  ;;  %v1909_v8 = vadd.f32 %v3626_v11, %v1838_v60 }
 0x147   : > { %v1704_v6 = vmul.f32 0.01, %v1640_v57  ;;  %v1641_v7 = vadd.f32 %v3601_v47, %v1394_v58  ;;  %2363 = vadd.xlane.f32.xlu0 %v2297_v0  ;;  %v1907_v18 = vadd.f32 %v3626_v11, %v1836_v4  ;;  %v2295_v46 = vsel %vm2231_vm1, %v1906_v59, 0.0 }
 0x148   : > { %v1770_v10 = vmax.f32 %v1642_v53, %v1706_v61  ;;  %v1707_v12 = vmul.f32 0.01, %v1643_v63  ;;  %v2298_v17 = vsel %vm2234_vm2, %v1909_v8, 0.0  ;;  %vm2249_vm0 = vcmp.eq.s32.totalorder %v3618_v2, %v3578_v35 }
 0x149   : > { %v2863_v13 = vpop.f32.mrb[8].mxu1  ;;  %v1768_v14 = vmax.f32 %v1640_v57, %v1704_v6  ;;  %v1705_v15 = vmul.f32 0.01, %v1641_v7  ;;  %v2943_v16 = vpop.f32.mrb[8].mxu0  ;;  %v2296_v52 = vsel %vm2232_vm3, %v1907_v18, 0.0  ;;  %vm2248_vm1 = vcmp.eq.s32.totalorder %v3618_v2, %v3576_v34 }
 0x14a   : > { %v877_v45 = vpop.f32.mrb[9].mxu1  ;;  %v1771_v48 = vmax.f32 %v1643_v63, %v1707_v12  ;;  %v1415_v50 = vadd.f32 %v2943_v16, %v2863_v13  ;;  %v1406_v51 = vpop.f32.mrb[9].mxu0  ;;  %v1841_v54 = vmul.f32 %v3613_v1, %v1770_v10  ;;  %2361 = vadd.xlane.f32.xlu1 %v2296_v52  ;;  %vm2247_vm2 = vcmp.eq.s32.totalorder %v3618_v2, %v3574_v33 }
 0x14b   : > { %v2864_v53 = vpop.f32.mrb[10].mxu1  ;;  %v1769_v55 = vmax.f32 %v1641_v7, %v1705_v15  ;;  %v1407_v19 = vadd.f32 %v1406_v51, %v877_v45  ;;  %v2944_v56 = vpop.f32.mrb[10].mxu0  ;;  %2359 = vadd.xlane.f32.xlu0 %v2295_v46  ;;  %v1839_v58 = vmul.f32 %v3613_v1, %v1768_v14  ;;  %vm2250_vm3 = vcmp.eq.s32.totalorder %v3618_v2, %v3580_v36 }
 0x14c   : > { %v880_v57 = vpop.f32.mrb[11].mxu1  ;;  %v1646_v59 = vadd.f32 %v3601_v47, %v1415_v50  ;;  %v1418_v60 = vadd.f32 %v2944_v56, %v2864_v53  ;;  %v1409_v61 = vpop.f32.mrb[11].mxu0  ;;  %v1912_v63 = vadd.f32 %v3626_v11, %v1841_v54  ;;  %v1842_v0 = vmul.f32 %v3613_v1, %v1771_v48 }
 0x14d   : > { %v1644_v4 = vadd.f32 %v3601_v47, %v1407_v19  ;;  %v1410_v6 = vadd.f32 %v1409_v61, %v880_v57  ;;  %v1910_v7 = vadd.f32 %v3626_v11, %v1839_v58  ;;  %v1840_v10 = vmul.f32 %v3613_v1, %v1769_v55  ;;  %v3676_v18 = vpop.permute.xlu1 %2139  ;;  %v3682_v45 = vpop.permute.xlu0 %2142 }
 0x14e   : > { %v1710_v12 = vmul.f32 0.01, %v1646_v59  ;;  %v1647_v20 = vadd.f32 %v3601_v47, %v1418_v60  ;;  %v2301_v8 = vsel %vm2237_vm4, %v1912_v63, 0.0  ;;  %v1913_v13 = vadd.f32 %v3626_v11, %v1842_v0 }
 0x14f   : > { %v1708_v14 = vmul.f32 0.01, %v1644_v4  ;;  %v1645_v15 = vadd.f32 %v3601_v47, %v1410_v6  ;;  %2371 = vadd.xlane.f32.xlu1 %v2301_v8  ;;  %2365 = vadd.xlane.f32.xlu0 %v2298_v17  ;;  %v1911_v16 = vadd.f32 %v3626_v11, %v1840_v10  ;;  %v2299_v54 = vsel %vm2235_vm6, %v1910_v7, 0.0 }
 0x150   : > { %v1774_v46 = vmax.f32 %v1646_v59, %v1710_v12  ;;  %v1711_v48 = vmul.f32 0.01, %v1647_v20  ;;  %v2302_v17 = vsel %vm2238_vm7, %v1913_v13, 0.0  ;;  %vm2253_vm4 = vcmp.eq.s32.totalorder %v3618_v2, %v3586_v39 }
 0x151   : > { %v2867_v23 = vpop.f32.mrb[12].mxu1  ;;  %v1772_v50 = vmax.f32 %v1644_v4, %v1708_v14  ;;  %v1709_v51 = vmul.f32 0.01, %v1645_v15  ;;  %v2947_v52 = vpop.f32.mrb[12].mxu0  ;;  %v2300_v61 = vsel %vm2236_vm5, %v1911_v16, 0.0  ;;  %vm2252_vm5 = vcmp.eq.s32.totalorder %v3618_v2, %v3584_v38 }
 0x152   : > { %v893_v53 = vpop.f32.mrb[13].mxu1  ;;  %v1775_v55 = vmax.f32 %v1647_v20, %v1711_v48  ;;  %v1431_v19 = vadd.f32 %v2947_v52, %v2867_v23  ;;  %v1422_v56 = vpop.f32.mrb[13].mxu0  ;;  %v1845_v58 = vmul.f32 %v3613_v1, %v1774_v46  ;;  %vm2251_vm6 = vcmp.eq.s32.totalorder %v3618_v2, %v3582_v37 }
 0x153   : > { %v2868_v57 = vpop.f32.mrb[14].mxu1  ;;  %v1773_v59 = vmax.f32 %v1645_v15, %v1709_v51  ;;  %v1423_v21 = vadd.f32 %v1422_v56, %v893_v53  ;;  %v2948_v60 = vpop.f32.mrb[14].mxu0  ;;  %2367 = vadd.xlane.f32.xlu1 %v2299_v54  ;;  %2373 = vadd.xlane.f32.xlu0 %v2302_v17  ;;  %v1843_v63 = vmul.f32 %v3613_v1, %v1772_v50 }
 0x154   : > { %v896_v24 = vpop.f32.mrb[15].mxu1  ;;  %v1650_v0 = vadd.f32 %v3601_v47, %v1431_v19  ;;  %v1434_v4 = vadd.f32 %v2948_v60, %v2868_v57  ;;  %v1425_v6 = vpop.f32.mrb[15].mxu0  ;;  %v1916_v7 = vadd.f32 %v3626_v11, %v1845_v58  ;;  %v1846_v10 = vmul.f32 %v3613_v1, %v1775_v55 }
 0x155   : > { %v1648_v12 = vadd.f32 %v3601_v47, %v1423_v21  ;;  %v1426_v20 = vadd.f32 %v1425_v6, %v896_v24  ;;  %v1914_v8 = vadd.f32 %v3626_v11, %v1843_v63  ;;  %v1844_v13 = vmul.f32 %v3613_v1, %v1773_v59  ;;  %v3706_v46 = vpop.permute.xlu1 %2145  ;;  %v3712_v51 = vpop.permute.xlu0 %2148 }
 0x156   : > { %v1714_v14 = vmul.f32 0.01, %v1650_v0  ;;  %v1651_v22 = vadd.f32 %v3601_v47, %v1434_v4  ;;  %v2305_v15 = vsel %vm2241_vm8, %v1916_v7, 0.0  ;;  %v1917_v16 = vadd.f32 %v3626_v11, %v1846_v10 }
 0x157   : > { %v1712_v48 = vmul.f32 0.01, %v1648_v12  ;;  %v1649_v23 = vadd.f32 %v3601_v47, %v1426_v20  ;;  %2379 = vadd.xlane.f32.xlu1 %v2305_v15  ;;  %2369 = vadd.xlane.f32.xlu0 %v2300_v61  ;;  %v1915_v50 = vadd.f32 %v3626_v11, %v1844_v13  ;;  %v2303_v57 = vsel %vm2239_vm10, %v1914_v8, 0.0 }
 0x158   : > { %v1778_v52 = vmax.f32 %v1650_v0, %v1714_v14  ;;  %v1715_v53 = vmul.f32 0.01, %v1651_v22  ;;  %v2306_v60 = vsel %vm2242_vm11, %v1917_v16, 0.0  ;;  %vm2254_vm7 = vcmp.eq.s32.totalorder %v3618_v2, %v3588_v40 }
 0x159   : > { %v2871_v27 = vpop.f32.mrb[16].mxu1  ;;  %v1776_v54 = vmax.f32 %v1648_v12, %v1712_v48  ;;  %v1713_v55 = vmul.f32 0.01, %v1649_v23  ;;  %v2951_v19 = vpop.f32.mrb[16].mxu0  ;;  %v2304_v0 = vsel %vm2240_vm9, %v1915_v50, 0.0  ;;  %vm2257_vm8 = vcmp.eq.s32.totalorder %v3618_v2, %v3594_v43 }
 0x15a   : > { %v909_v56 = vpop.f32.mrb[17].mxu1  ;;  %v1779_v17 = vmax.f32 %v1651_v22, %v1715_v53  ;;  %v1447_v58 = vadd.f32 %v2951_v19, %v2871_v27  ;;  %v1438_v59 = vpop.f32.mrb[17].mxu0  ;;  %v1849_v24 = vmul.f32 %v3613_v1, %v1778_v52  ;;  %vm2256_vm9 = vcmp.eq.s32.totalorder %v3618_v2, %v3592_v42 }
 0x15b   : > { %v2872_v21 = vpop.f32.mrb[18].mxu1  ;;  %v1777_v61 = vmax.f32 %v1649_v23, %v1713_v55  ;;  %v1439_v25 = vadd.f32 %v1438_v59, %v909_v56  ;;  %v2952_v63 = vpop.f32.mrb[18].mxu0  ;;  %2375 = vadd.xlane.f32.xlu1 %v2303_v57  ;;  %2381 = vadd.xlane.f32.xlu0 %v2306_v60  ;;  %v1847_v4 = vmul.f32 %v3613_v1, %v1776_v54 }
 0x15c   : > { %v912_v28 = vpop.f32.mrb[19].mxu1  ;;  %v1654_v6 = vadd.f32 %v3601_v47, %v1447_v58  ;;  %v1450_v7 = vadd.f32 %v2952_v63, %v2872_v21  ;;  %v1441_v10 = vpop.f32.mrb[19].mxu0  ;;  %v1920_v12 = vadd.f32 %v3626_v11, %v1849_v24  ;;  %v1850_v20 = vmul.f32 %v3613_v1, %v1779_v17 }
 0x15d   : > { %v1652_v8 = vadd.f32 %v3601_v47, %v1439_v25  ;;  %v1442_v13 = vadd.f32 %v1441_v10, %v912_v28  ;;  %v1918_v14 = vadd.f32 %v3626_v11, %v1847_v4  ;;  %v1848_v22 = vmul.f32 %v3613_v1, %v1777_v61  ;;  %v3736_v23 = vpop.permute.xlu1 %2151  ;;  %v3742_v27 = vpop.permute.xlu0 %2154 }
 0x15e   : > { %v1718_v15 = vmul.f32 0.01, %v1654_v6  ;;  %v1655_v26 = vadd.f32 %v3601_v47, %v1450_v7  ;;  %v2309_v16 = vsel %vm2245_vm12, %v1920_v12, 0.0  ;;  %v1921_v48 = vadd.f32 %v3626_v11, %v1850_v20 }
 0x15f   : > { %v1716_v50 = vmul.f32 0.01, %v1652_v8  ;;  %v1653_v52 = vadd.f32 %v3601_v47, %v1442_v13  ;;  %2387 = vadd.xlane.f32.xlu1 %v2309_v16  ;;  %2377 = vadd.xlane.f32.xlu0 %v2304_v0  ;;  %v1919_v53 = vadd.f32 %v3626_v11, %v1848_v22  ;;  %v2307_v58 = vsel %vm2243_vm14, %v1918_v14, 0.0 }
 0x160   : > { %v1782_v54 = vmax.f32 %v1654_v6, %v1718_v15  ;;  %v1719_v55 = vmul.f32 0.01, %v1655_v26  ;;  %v2310_v61 = vsel %vm2246_vm15, %v1921_v48, 0.0  ;;  %vm2255_vm10 = vcmp.eq.s32.totalorder %v3618_v2, %v3590_v41 }
 0x161   : > { %v2875_v31 = vpop.f32.mrb[20].mxu1  ;;  %v1780_v19 = vmax.f32 %v1652_v8, %v1716_v50  ;;  %v1717_v56 = vmul.f32 0.01, %v1653_v52  ;;  %v2955_v57 = vpop.f32.mrb[20].mxu0  ;;  %v2308_v0 = vsel %vm2244_vm13, %v1919_v53, 0.0  ;;  %vm2258_vm11 = vcmp.eq.s32.totalorder %v3618_v2, %v3596_v44 }
 0x162   : > { %v925_v17 = vpop.f32.mrb[21].mxu1  ;;  %v1783_v59 = vmax.f32 %v1655_v26, %v1719_v55  ;;  %v1463_v21 = vadd.f32 %v2955_v57, %v2875_v31  ;;  %v1454_v60 = vpop.f32.mrb[21].mxu0  ;;  %v1853_v25 = vmul.f32 %v3613_v1, %v1782_v54  ;;  %vm2261_vm12 = vcmp.eq.s32.totalorder %v3618_v2, %v3620_v3 }
 0x163   : > { %v2876_v24 = vpop.f32.mrb[22].mxu1  ;;  %v1781_v63 = vmax.f32 %v1653_v52, %v1717_v56  ;;  %v1455_v29 = vadd.f32 %v1454_v60, %v925_v17  ;;  %v2956_v28 = vpop.f32.mrb[22].mxu0  ;;  %2383 = vadd.xlane.f32.xlu1 %v2307_v58  ;;  %2389 = vadd.xlane.f32.xlu0 %v2310_v61  ;;  %v1851_v4 = vmul.f32 %v3613_v1, %v1780_v19 }
 0x164   : > { %v928_v32 = vpop.f32.mrb[23].mxu1  ;;  %v1658_v6 = vadd.f32 %v3601_v47, %v1463_v21  ;;  %v1466_v7 = vadd.f32 %v2956_v28, %v2876_v24  ;;  %v1457_v10 = vpop.f32.mrb[23].mxu0  ;;  %v1924_v12 = vadd.f32 %v3626_v11, %v1853_v25  ;;  %v1854_v20 = vmul.f32 %v3613_v1, %v1783_v59 }
 0x165   : > { %v1656_v8 = vadd.f32 %v3601_v47, %v1455_v29  ;;  %v1458_v13 = vadd.f32 %v1457_v10, %v928_v32  ;;  %v1922_v14 = vadd.f32 %v3626_v11, %v1851_v4  ;;  %v1852_v22 = vmul.f32 %v3613_v1, %v1781_v63  ;;  %v3766_v48 = vpop.permute.xlu1 %2157  ;;  %v3772_v54 = vpop.permute.xlu0 %2160 }
 0x166   : > { %v1722_v15 = vmul.f32 0.01, %v1658_v6  ;;  %v1659_v30 = vadd.f32 %v3601_v47, %v1466_v7  ;;  %v2313_v26 = vsel %vm2249_vm0, %v1924_v12, 0.0  ;;  %v1925_v16 = vadd.f32 %v3626_v11, %v1854_v20 }
 0x167   : > { %v1720_v50 = vmul.f32 0.01, %v1656_v8  ;;  %v1657_v52 = vadd.f32 %v3601_v47, %v1458_v13  ;;  %2395 = vadd.xlane.f32.xlu1 %v2313_v26  ;;  %2385 = vadd.xlane.f32.xlu0 %v2308_v0  ;;  %v1923_v53 = vadd.f32 %v3626_v11, %v1852_v22  ;;  %v2311_v58 = vsel %vm2247_vm2, %v1922_v14, 0.0 }
 0x168   : > { %v1786_v55 = vmax.f32 %v1658_v6, %v1722_v15  ;;  %v1723_v31 = vmul.f32 0.01, %v1659_v30  ;;  %v2314_v61 = vsel %vm2250_vm3, %v1925_v16, 0.0  ;;  %vm2260_vm13 = vcmp.eq.s32.totalorder %v3618_v2, %v3607_v62 }
 0x169   : > { %v2879_v35 = vpop.f32.mrb[24].mxu1  ;;  %v1784_v19 = vmax.f32 %v1656_v8, %v1720_v50  ;;  %v1721_v56 = vmul.f32 0.01, %v1657_v52  ;;  %v2959_v57 = vpop.f32.mrb[24].mxu0  ;;  %v2312_v28 = vsel %vm2248_vm1, %v1923_v53, 0.0  ;;  %vm2262_vm14 = vcmp.eq.s32.totalorder %v3618_v2, %v3644_v5 }
 0x16a   : > { %v941_v17 = vpop.f32.mrb[25].mxu1  ;;  %v1787_v59 = vmax.f32 %v1659_v30, %v1723_v31  ;;  %v1479_v21 = vadd.f32 %v2959_v57, %v2879_v35  ;;  %v1470_v60 = vpop.f32.mrb[25].mxu0  ;;  %v1857_v25 = vmul.f32 %v3613_v1, %v1786_v55  ;;  %vm2259_vm15 = vcmp.eq.s32.totalorder %v3618_v2, %v3603_v49 }
 0x16b   : > { %v2880_v24 = vpop.f32.mrb[26].mxu1  ;;  %v1785_v63 = vmax.f32 %v1657_v52, %v1721_v56  ;;  %v1471_v33 = vadd.f32 %v1470_v60, %v941_v17  ;;  %v2960_v29 = vpop.f32.mrb[26].mxu0  ;;  %2391 = vadd.xlane.f32.xlu1 %v2311_v58  ;;  %2397 = vadd.xlane.f32.xlu0 %v2314_v61  ;;  %v1855_v32 = vmul.f32 %v3613_v1, %v1784_v19 }
 0x16c   : > { %v944_v36 = vpop.f32.mrb[27].mxu1  ;;  %v1662_v0 = vadd.f32 %v3601_v47, %v1479_v21  ;;  %v1482_v4 = vadd.f32 %v2960_v29, %v2880_v24  ;;  %v1473_v6 = vpop.f32.mrb[27].mxu0  ;;  %v1928_v7 = vadd.f32 %v3626_v11, %v1857_v25  ;;  %v1858_v10 = vmul.f32 %v3613_v1, %v1787_v59 }
 0x16d   : > { %v1660_v12 = vadd.f32 %v3601_v47, %v1471_v33  ;;  %v1474_v20 = vadd.f32 %v1473_v6, %v944_v36  ;;  %v1926_v8 = vadd.f32 %v3626_v11, %v1855_v32  ;;  %v1856_v13 = vmul.f32 %v3613_v1, %v1785_v63  ;;  %v3796_v30 = vpop.permute.xlu1 %2163  ;;  %v3802_v52 = vpop.permute.xlu0 %2166 }
 0x16e   : > { %v1726_v14 = vmul.f32 0.01, %v1662_v0  ;;  %v1663_v34 = vadd.f32 %v3601_v47, %v1482_v4  ;;  %v2317_v22 = vsel %vm2253_vm4, %v1928_v7, 0.0  ;;  %v1929_v15 = vadd.f32 %v3626_v11, %v1858_v10 }
 0x16f   : > { %v1724_v26 = vmul.f32 0.01, %v1660_v12  ;;  %v1661_v16 = vadd.f32 %v3601_v47, %v1474_v20  ;;  %2403 = vadd.xlane.f32.xlu1 %v2317_v22  ;;  %2393 = vadd.xlane.f32.xlu0 %v2312_v28  ;;  %v1927_v50 = vadd.f32 %v3626_v11, %v1856_v13  ;;  %v2315_v57 = vsel %vm2251_vm6, %v1926_v8, 0.0 }
 0x170   : > { %v1790_v53 = vmax.f32 %v1662_v0, %v1726_v14  ;;  %v1727_v55 = vmul.f32 0.01, %v1663_v34  ;;  %v2318_v60 = vsel %vm2254_vm7, %v1929_v15, 0.0  ;;  %vm2265_vm0 = vcmp.eq.s32.totalorder %v3618_v2, %v3682_v45 }
 0x171   : > { %v2883_v39 = vpop.f32.mrb[28].mxu1  ;;  %v1788_v31 = vmax.f32 %v1660_v12, %v1724_v26  ;;  %v1725_v35 = vmul.f32 0.01, %v1661_v16  ;;  %v2963_v19 = vpop.f32.mrb[28].mxu0  ;;  %v2316_v63 = vsel %vm2252_vm5, %v1927_v50, 0.0  ;;  %vm2264_vm1 = vcmp.eq.s32.totalorder %v3618_v2, %v3676_v18 }
 0x172   : > { %v957_v56 = vpop.f32.mrb[29].mxu1  ;;  %v1791_v17 = vmax.f32 %v1663_v34, %v1727_v55  ;;  %v1495_v58 = vadd.f32 %v2963_v19, %v2883_v39  ;;  %v1486_v59 = vpop.f32.mrb[29].mxu0  ;;  %v1861_v24 = vmul.f32 %v3613_v1, %v1790_v53  ;;  %vm2263_vm2 = vcmp.eq.s32.totalorder %v3618_v2, %v3650_v9 }
 0x173   : > { %v2884_v21 = vpop.f32.mrb[30].mxu1  ;;  %v1789_v61 = vmax.f32 %v1661_v16, %v1725_v35  ;;  %v1487_v37 = vadd.f32 %v1486_v59, %v957_v56  ;;  %v2964_v25 = vpop.f32.mrb[30].mxu0  ;;  %2399 = vadd.xlane.f32.xlu1 %v2315_v57  ;;  %2405 = vadd.xlane.f32.xlu0 %v2318_v60  ;;  %v1859_v33 = vmul.f32 %v3613_v1, %v1788_v31 }
 0x174   : > { %v960_v40 = vpop.f32.mrb[31].mxu1  ;;  %v1666_v29 = vadd.f32 %v3601_v47, %v1495_v58  ;;  %v1498_v36 = vadd.f32 %v2964_v25, %v2884_v21  ;;  %v1489_v28 = vpop.f32.mrb[31].mxu0  ;;  %v1932_v32 = vadd.f32 %v3626_v11, %v1861_v24  ;;  %v1862_v0 = vmul.f32 %v3613_v1, %v1791_v17 }
 0x175   : > { %v1664_v4 = vadd.f32 %v3601_v47, %v1487_v37  ;;  %v1490_v6 = vadd.f32 %v1489_v28, %v960_v40  ;;  %v1930_v7 = vadd.f32 %v3626_v11, %v1859_v33  ;;  %v1860_v10 = vmul.f32 %v3613_v1, %v1789_v61  ;;  %v3826_v13 = vpop.permute.xlu1 %2169  ;;  %v3832_v15 = vpop.permute.xlu0 %2172 }
 0x176   : > { %v1730_v12 = vmul.f32 0.01, %v1666_v29  ;;  %v1667_v38 = vadd.f32 %v3601_v47, %v1498_v36  ;;  %v2321_v20 = vsel %vm2257_vm8, %v1932_v32, 0.0  ;;  %v1933_v8 = vadd.f32 %v3626_v11, %v1862_v0 }
 0x177   : > { %v1728_v14 = vmul.f32 0.01, %v1664_v4  ;;  %v1665_v34 = vadd.f32 %v3601_v47, %v1490_v6  ;;  %2411 = vadd.xlane.f32.xlu1 %v2321_v20  ;;  %2401 = vadd.xlane.f32.xlu0 %v2316_v63  ;;  %v1931_v22 = vadd.f32 %v3626_v11, %v1860_v10  ;;  %v2319_v31 = vsel %vm2255_vm10, %v1930_v7, 0.0 }
 0x178   : > { %v1794_v26 = vmax.f32 %v1666_v29, %v1730_v12  ;;  %v1731_v16 = vmul.f32 0.01, %v1667_v38  ;;  %v2322_v17 = vsel %vm2258_vm11, %v1933_v8, 0.0  ;;  %vm2266_vm3 = vcmp.eq.s32.totalorder %v3618_v2, %v3706_v46 }
 0x179   : > { %v2887_v43 = vpop.f32.mrb[32].mxu1  ;;  %v1792_v50 = vmax.f32 %v1664_v4, %v1728_v14  ;;  %v1729_v53 = vmul.f32 0.01, %v1665_v34  ;;  %v2967_v55 = vpop.f32.mrb[32].mxu0  ;;  %v2320_v60 = vsel %vm2256_vm9, %v1931_v22, 0.0  ;;  %vm2269_vm4 = vcmp.eq.s32.totalorder %v3618_v2, %v3742_v27 }
 0x17a   : > { %v973_v39 = vpop.f32.mrb[33].mxu1  ;;  %v1795_v35 = vmax.f32 %v1667_v38, %v1731_v16  ;;  %v1511_v19 = vadd.f32 %v2967_v55, %v2887_v43  ;;  %v1502_v56 = vpop.f32.mrb[33].mxu0  ;;  %v1865_v58 = vmul.f32 %v3613_v1, %v1794_v26  ;;  %vm2268_vm5 = vcmp.eq.s32.totalorder %v3618_v2, %v3736_v23 }
 0x17b   : > { %v2888_v57 = vpop.f32.mrb[34].mxu1  ;;  %v1793_v59 = vmax.f32 %v1665_v34, %v1729_v53  ;;  %v1503_v41 = vadd.f32 %v1502_v56, %v973_v39  ;;  %v2968_v21 = vpop.f32.mrb[34].mxu0  ;;  %2407 = vadd.xlane.f32.xlu1 %v2319_v31  ;;  %2413 = vadd.xlane.f32.xlu0 %v2322_v17  ;;  %v1863_v24 = vmul.f32 %v3613_v1, %v1792_v50 }
 0x17c   : > { %v976_v44 = vpop.f32.mrb[35].mxu1  ;;  %v1670_v61 = vadd.f32 %v3601_v47, %v1511_v19  ;;  %v1514_v37 = vadd.f32 %v2968_v21, %v2888_v57  ;;  %v1505_v25 = vpop.f32.mrb[35].mxu0  ;;  %v1936_v40 = vadd.f32 %v3626_v11, %v1865_v58  ;;  %v1866_v63 = vmul.f32 %v3613_v1, %v1795_v35 }
 0x17d   : > { %v1668_v33 = vadd.f32 %v3601_v47, %v1503_v41  ;;  %v1506_v29 = vadd.f32 %v1505_v25, %v976_v44  ;;  %v1934_v36 = vadd.f32 %v3626_v11, %v1863_v24  ;;  %v1864_v28 = vmul.f32 %v3613_v1, %v1793_v59  ;;  %v3858_v6 = vpop.permute.xlu1 %2175  ;;  %v3864_v38 = vpop.permute.xlu0 %2178 }
 0x17e   : > { %v1734_v32 = vmul.f32 0.01, %v1670_v61  ;;  %v1671_v42 = vadd.f32 %v3601_v47, %v1514_v37  ;;  %v2325_v0 = vsel %vm2261_vm12, %v1936_v40, 0.0  ;;  %v1937_v4 = vadd.f32 %v3626_v11, %v1866_v63 }
 0x17f   : > { %v1732_v7 = vmul.f32 0.01, %v1668_v33  ;;  %v1669_v10 = vadd.f32 %v3601_v47, %v1506_v29  ;;  %2419 = vadd.xlane.f32.xlu1 %v2325_v0  ;;  %2409 = vadd.xlane.f32.xlu0 %v2320_v60  ;;  %v1935_v12 = vadd.f32 %v3626_v11, %v1864_v28  ;;  %v2323_v16 = vsel %vm2259_vm15, %v1934_v36, 0.0 }
 0x180   : > { %v1798_v3 = vmax.f32 %v1670_v61, %v1734_v32  ;;  %v1735_v20 = vmul.f32 0.01, %v1671_v42  ;;  %v2326_v39 = vsel %vm2262_vm14, %v1937_v4, 0.0  ;;  %vm2267_vm6 = vcmp.eq.s32.totalorder %v3618_v2, %v3712_v51 }
 0x181   : > { %v2891_v8 = vpop.f32.mrb[36].mxu1  ;;  %v1796_v14 = vmax.f32 %v1668_v33, %v1732_v7  ;;  %v1733_v34 = vmul.f32 0.01, %v1669_v10  ;;  %v2971_v22 = vpop.f32.mrb[36].mxu0  ;;  %v2324_v57 = vsel %vm2260_vm13, %v1935_v12, 0.0  ;;  %vm2270_vm7 = vcmp.eq.s32.totalorder %v3618_v2, %v3766_v48 }
 0x182   : > { %v989_v26 = vpop.f32.mrb[37].mxu1  ;;  %v1799_v43 = vmax.f32 %v1671_v42, %v1735_v20  ;;  %v1527_v50 = vadd.f32 %v2971_v22, %v2891_v8  ;;  %v1518_v53 = vpop.f32.mrb[37].mxu0  ;;  %v1869_v31 = vmul.f32 %v3613_v1, %v1798_v3  ;;  %vm2273_vm8 = vcmp.eq.s32.totalorder %v3618_v2, %v3802_v52 }
 0x183   : > { %v2892_v55 = vpop.f32.mrb[38].mxu1  ;;  %v1797_v35 = vmax.f32 %v1669_v10, %v1733_v34  ;;  %v1519_v49 = vadd.f32 %v1518_v53, %v989_v26  ;;  %v2972_v19 = vpop.f32.mrb[38].mxu0  ;;  %2415 = vadd.xlane.f32.xlu1 %v2323_v16  ;;  %2421 = vadd.xlane.f32.xlu0 %v2326_v39  ;;  %v1867_v17 = vmul.f32 %v3613_v1, %v1796_v14 }
 0x184   : > { %v992_v56 = vpop.f32.mrb[39].mxu1  ;;  %v1674_v58 = vadd.f32 %v3601_v47, %v1527_v50  ;;  %v1530_v59 = vadd.f32 %v2972_v19, %v2892_v55  ;;  %v1521_v41 = vpop.f32.mrb[39].mxu0  ;;  %v1940_v5 = vadd.f32 %v3626_v11, %v1869_v31  ;;  %v1870_v21 = vmul.f32 %v3613_v1, %v1799_v43 }
 0x185   : > { %v1672_v44 = vadd.f32 %v3601_v47, %v1519_v49  ;;  %v1522_v60 = vadd.f32 %v1521_v41, %v992_v56  ;;  %v1938_v24 = vadd.f32 %v3626_v11, %v1867_v17  ;;  %v1868_v61 = vmul.f32 %v3613_v1, %v1797_v35  ;;  %v3891_v63 = vpop.permute.xlu1 %2181  ;;  %v3899_v45 = vpop.permute.xlu0 %2184 }
 0x186   : > { %v1738_v37 = vmul.f32 0.01, %v1674_v58  ;;  %v1675_v62 = vadd.f32 %v3601_v47, %v1530_v59  ;;  %v2329_v25 = vsel %vm2265_vm0, %v1940_v5, 0.0  ;;  %v1941_v40 = vadd.f32 %v3626_v11, %v1870_v21 }
 0x187   : > { %v1736_v33 = vmul.f32 0.01, %v1672_v44  ;;  %v1673_v29 = vadd.f32 %v3601_v47, %v1522_v60  ;;  %2427 = vadd.xlane.f32.xlu1 %v2329_v25  ;;  %2417 = vadd.xlane.f32.xlu0 %v2324_v57  ;;  %v1939_v36 = vadd.f32 %v3626_v11, %v1868_v61  ;;  %v2327_v12 = vsel %vm2263_vm2, %v1938_v24, 0.0 }
 0x188   : > { %v1802_v28 = vmax.f32 %v1674_v58, %v1738_v37  ;;  %v1739_v32 = vmul.f32 0.01, %v1675_v62  ;;  %v2330_v14 = vsel %vm2266_vm3, %v1941_v40, 0.0  ;;  %vm2272_vm9 = vcmp.eq.s32.totalorder %v3618_v2, %v3796_v30 }
 0x189   : > { %v2895_v42 = vpop.f32.mrb[40].mxu1  ;;  %v1800_v0 = vmax.f32 %v1672_v44, %v1736_v33  ;;  %v1737_v4 = vmul.f32 0.01, %v1673_v29  ;;  %v2975_v7 = vpop.f32.mrb[40].mxu0  ;;  %v2328_v43 = vsel %vm2264_vm1, %v1939_v36, 0.0  ;;  %vm2271_vm10 = vcmp.eq.s32.totalorder %v3618_v2, %v3772_v54 }
 0x18a   : > { %v1005_v10 = vpop.f32.mrb[41].mxu1  ;;  %v1803_v3 = vmax.f32 %v1675_v62, %v1739_v32  ;;  %v1543_v20 = vadd.f32 %v2975_v7, %v2895_v42  ;;  %v1534_v8 = vpop.f32.mrb[41].mxu0  ;;  %v1873_v46 = vmul.f32 %v3613_v1, %v1802_v28  ;;  %vm2274_vm11 = vcmp.eq.s32.totalorder %v3618_v2, %v3826_v13  ;;  %v3971_v13 = vld [vmem:[%s4248_s6] ss:$0 sm:$0xff] }
 0x18b   : > { %v2896_v9 = vpop.f32.mrb[42].mxu1  ;;  %v1801_v34 = vmax.f32 %v1673_v29, %v1737_v4  ;;  %v1535_v22 = vadd.f32 %v1534_v8, %v1005_v10  ;;  %v2976_v26 = vpop.f32.mrb[42].mxu0  ;;  %2423 = vadd.xlane.f32.xlu1 %v2327_v12  ;;  %2429 = vadd.xlane.f32.xlu0 %v2330_v14  ;;  %v1871_v50 = vmul.f32 %v3613_v1, %v1800_v0 }
 0x18c   : > { %v1008_v16 = vpop.f32.mrb[43].mxu1  ;;  %v1678_v53 = vadd.f32 %v3601_v47, %v1543_v20  ;;  %v1546_v55 = vadd.f32 %v2976_v26, %v2896_v9  ;;  %v1537_v39 = vpop.f32.mrb[43].mxu0  ;;  %v1944_v31 = vadd.f32 %v3626_v11, %v1873_v46  ;;  %v1874_v35 = vmul.f32 %v3613_v1, %v1803_v3 }
 0x18d   : > { %v1676_v49 = vadd.f32 %v3601_v47, %v1535_v22  ;;  %v1538_v19 = vadd.f32 %v1537_v39, %v1008_v16  ;;  %v1942_v56 = vadd.f32 %v3626_v11, %v1871_v50  ;;  %v1872_v57 = vmul.f32 %v3613_v1, %v1801_v34  ;;  %v3921_v41 = vpop.permute.xlu1 %2187  ;;  %v3929_v27 = vpop.permute.xlu0 %2190  ;;  %v3956_v39 = vld [vmem:[%s4247_s5] ss:$0 sm:$0xff] }
 0x18e   : > { %v1742_v17 = vmul.f32 0.01, %v1678_v53  ;;  %v1679_v18 = vadd.f32 %v3601_v47, %v1546_v55  ;;  %v2333_v58 = vsel %vm2269_vm4, %v1944_v31, 0.0  ;;  %v1945_v59 = vadd.f32 %v3626_v11, %v1874_v35 }
 0x18f   : > { %v1740_v5 = vmul.f32 0.01, %v1676_v49  ;;  %v1677_v21 = vadd.f32 %v3601_v47, %v1538_v19  ;;  %2435 = vadd.xlane.f32.xlu1 %v2333_v58  ;;  %2425 = vadd.xlane.f32.xlu0 %v2328_v43  ;;  %v1943_v44 = vadd.f32 %v3626_v11, %v1872_v57  ;;  %v2331_v33 = vsel %vm2267_vm6, %v1942_v56, 0.0 }
 0x190   : > { %v1806_v60 = vmax.f32 %v1678_v53, %v1742_v17  ;;  %v1743_v24 = vmul.f32 0.01, %v1679_v18  ;;  %v2334_v32 = vsel %vm2270_vm7, %v1945_v59, 0.0  ;;  %vm2277_vm12 = vcmp.eq.s32.totalorder %v3618_v2, %v3864_v38 }
 0x191   : > { %v2899_v61 = vpop.f32.mrb[44].mxu1  ;;  %v1804_v37 = vmax.f32 %v1676_v49, %v1740_v5  ;;  %v1741_v62 = vmul.f32 0.01, %v1677_v21  ;;  %v2979_v25 = vpop.f32.mrb[44].mxu0  ;;  %v2332_v10 = vsel %vm2268_vm5, %v1943_v44, 0.0 }
 0x192   : > { %v1021_v40 = vpop.f32.mrb[45].mxu1  ;;  %v1807_v29 = vmax.f32 %v1679_v18, %v1743_v24  ;;  %v1559_v36 = vadd.f32 %v2979_v25, %v2899_v61  ;;  %v1550_v28 = vpop.f32.mrb[45].mxu0  ;;  %v1877_v48 = vmul.f32 %v3613_v1, %v1806_v60 }
 0x193   : > { %v2900_v51 = vpop.f32.mrb[46].mxu1  ;;  %v1805_v42 = vmax.f32 %v1677_v21, %v1741_v62  ;;  %v1551_v0 = vadd.f32 %v1550_v28, %v1021_v40  ;;  %v2980_v4 = vpop.f32.mrb[46].mxu0  ;;  %2431 = vadd.xlane.f32.xlu1 %v2331_v33  ;;  %2437 = vadd.xlane.f32.xlu0 %v2334_v32  ;;  %v1875_v12 = vmul.f32 %v3613_v1, %v1804_v37 }
 0x194   : > { %v1024_v7 = vpop.f32.mrb[47].mxu1  ;;  %v1682_v3 = vadd.f32 %v3601_v47, %v1559_v36  ;;  %v1562_v20 = vadd.f32 %v2980_v4, %v2900_v51  ;;  %v1553_v8 = vpop.f32.mrb[47].mxu0  ;;  %v1948_v9 = vadd.f32 %v3626_v11, %v1877_v48  ;;  %v1878_v14 = vmul.f32 %v3613_v1, %v1807_v29  ;;  %v3982_v29 = vld [vmem:[%s4249_s7] ss:$0 sm:$0xff] }
 0x195   : > { %v1680_v46 = vadd.f32 %v3601_v47, %v1551_v0  ;;  %v1554_v34 = vadd.f32 %v1553_v8, %v1024_v7  ;;  %v1946_v22 = vadd.f32 %v3626_v11, %v1875_v12  ;;  %v1876_v26 = vmul.f32 %v3613_v1, %v1805_v42  ;;  %v3951_v53 = vpop.permute.xlu1 %2193  ;;  %v3964_v52 = vpop.permute.xlu0 %2196 }
 0x196   : > { %v1746_v16 = vmul.f32 0.01, %v1682_v3  ;;  %v1683_v23 = vadd.f32 %v3601_v47, %v1562_v20  ;;  %v2337_v43 = vsel %vm2273_vm8, %v1948_v9, 0.0  ;;  %v1949_v50 = vadd.f32 %v3626_v11, %v1878_v14 }
 0x197   : > { %v1744_v55 = vmul.f32 0.01, %v1680_v46  ;;  %v1681_v1 = vadd.f32 %v3956_v39, %v1554_v34  ;;  %2443 = vadd.xlane.f32.xlu1 %v2337_v43  ;;  %2433 = vadd.xlane.f32.xlu0 %v2332_v10  ;;  %v1947_v47 = vadd.f32 %v3626_v11, %v1876_v26  ;;  %v2335_v18 = vsel %vm2271_vm10, %v1946_v22, 0.0  ;;  %v3997_v10 = vld [vmem:[%s4250_s8] ss:$0 sm:$0xff] }
 0x198   : > { %v1810_v31 = vmax.f32 %v1682_v3, %v1746_v16  ;;  %v1747_v35 = vmul.f32 0.01, %v1683_v23  ;;  %v2338_v5 = vsel %vm2274_vm11, %v1949_v50, 0.0  ;;  %vm2276_vm13 = vcmp.eq.s32.totalorder %v3997_v10, %v3858_v6 }
 0x199   : > { %v2903_v49 = vpop.f32.mrb[48].mxu1  ;;  %v1808_v19 = vmax.f32 %v1680_v46, %v1744_v55  ;;  %v1745_v56 = vmul.f32 0.01, %v1681_v1  ;;  %v2983_v57 = vpop.f32.mrb[48].mxu0  ;;  %v2336_v37 = vsel %vm2272_vm9, %v1947_v47, 0.0  ;;  %vm2275_vm14 = vcmp.eq.s32.totalorder %v3997_v10, %v3832_v15 }
 0x19a   : > { %v1037_v17 = vpop.f32.mrb[49].mxu1  ;;  %v1811_v11 = vmax.f32 %v1683_v23, %v1747_v35  ;;  %v1575_v58 = vadd.f32 %v2983_v57, %v2903_v49  ;;  %v1566_v59 = vpop.f32.mrb[49].mxu0  ;;  %v1881_v21 = vmul.f32 %v3971_v13, %v1810_v31  ;;  %vm2278_vm15 = vcmp.eq.s32.totalorder %v3997_v10, %v3891_v63 }
 0x19b   : > { %v2904_v54 = vpop.f32.mrb[50].mxu1  ;;  %v1809_v44 = vmax.f32 %v1681_v1, %v1745_v56  ;;  %v1567_v60 = vadd.f32 %v1566_v59, %v1037_v17  ;;  %v2984_v24 = vpop.f32.mrb[50].mxu0  ;;  %2439 = vadd.xlane.f32.xlu1 %v2335_v18  ;;  %2445 = vadd.xlane.f32.xlu0 %v2338_v5  ;;  %v1879_v62 = vmul.f32 %v3971_v13, %v1808_v19 }
 0x19c   : > { %v1040_v61 = vpop.f32.mrb[51].mxu1  ;;  %v1686_v25 = vadd.f32 %v3956_v39, %v1575_v58  ;;  %v1578_v40 = vadd.f32 %v2984_v24, %v2904_v54  ;;  %v1569_v33 = vpop.f32.mrb[51].mxu0  ;;  %v1952_v36 = vadd.f32 %v3982_v29, %v1881_v21  ;;  %v1882_v28 = vmul.f32 %v3971_v13, %v1811_v11 }
 0x19d   : > { %v1684_v51 = vadd.f32 %v3956_v39, %v1567_v60  ;;  %v1570_v32 = vadd.f32 %v1569_v33, %v1040_v61  ;;  %v1950_v30 = vadd.f32 %v3982_v29, %v1879_v62  ;;  %v1880_v48 = vmul.f32 %v3971_v13, %v1809_v44  ;;  %v4001_v12 = vpop.permute.xlu1 %2199  ;;  %v4009_v38 = vpop.permute.xlu0 %2202 }
 0x19e   : > { %v1750_v42 = vmul.f32 0.01, %v1686_v25  ;;  %v1687_v0 = vadd.f32 %v3956_v39, %v1578_v40  ;;  %v2341_v4 = vsel %vm2277_vm12, %v1952_v36, 0.0  ;;  %v1953_v7 = vadd.f32 %v3982_v29, %v1882_v28 }
 0x19f   : > { %v1748_v3 = vmul.f32 0.01, %v1684_v51  ;;  %v1685_v20 = vadd.f32 %v3956_v39, %v1570_v32  ;;  %2451 = vadd.xlane.f32.xlu1 %v2341_v4  ;;  %2441 = vadd.xlane.f32.xlu0 %v2336_v37  ;;  %v1951_v2 = vadd.f32 %v3982_v29, %v1880_v48  ;;  %vm2281_vm0 = vcmp.eq.s32.totalorder %v3997_v10, %v3929_v27 }
 0x1a0   : > { %v1814_v8 = vmax.f32 %v1686_v25, %v1750_v42  ;;  %v1751_v9 = vmul.f32 0.01, %v1687_v0  ;;  %v2339_v16 = vsel %vm2275_vm14, %v1950_v30, 0.0  ;;  %v2342_v55 = vsel %vm2278_vm15, %v1953_v7, 0.0 }
 0x1a1   : > { %v2907_v14 = vpop.f32.mrb[52].mxu1  ;;  %v1812_v46 = vmax.f32 %v1684_v51, %v1748_v3  ;;  %v1749_v34 = vmul.f32 0.01, %v1685_v20  ;;  %v2987_v22 = vpop.f32.mrb[52].mxu0  ;;  %v2340_v49 = vsel %vm2276_vm13, %v1951_v2, 0.0  ;;  %vm2280_vm1 = vcmp.eq.s32.totalorder %v3997_v10, %v3921_v41 }
 0x1a2   : > { %v1053_v26 = vpop.f32.mrb[53].mxu1  ;;  %v1815_v23 = vmax.f32 %v1687_v0, %v1751_v9  ;;  %v1591_v43 = vadd.f32 %v2987_v22, %v2907_v14  ;;  %v1582_v50 = vpop.f32.mrb[53].mxu0  ;;  %v1885_v63 = vmul.f32 %v3971_v13, %v1814_v8  ;;  %vm2279_vm2 = vcmp.eq.s32.totalorder %v3997_v10, %v3899_v45 }
 0x1a3   : > { %v2908_v15 = vpop.f32.mrb[54].mxu1  ;;  %v1813_v1 = vmax.f32 %v1685_v20, %v1749_v34  ;;  %v1583_v47 = vadd.f32 %v1582_v50, %v1053_v26  ;;  %v2988_v31 = vpop.f32.mrb[54].mxu0  ;;  %2447 = vadd.xlane.f32.xlu1 %v2339_v16  ;;  %2453 = vadd.xlane.f32.xlu0 %v2342_v55  ;;  %v1883_v19 = vmul.f32 %v3971_v13, %v1812_v46 }
 0x1a4   : > { %v1056_v35 = vpop.f32.mrb[55].mxu1  ;;  %v1690_v56 = vadd.f32 %v3956_v39, %v1591_v43  ;;  %v1594_v57 = vadd.f32 %v2988_v31, %v2908_v15  ;;  %v1585_v17 = vpop.f32.mrb[55].mxu0  ;;  %v1956_v18 = vadd.f32 %v3982_v29, %v1885_v63  ;;  %v1886_v11 = vmul.f32 %v3971_v13, %v1815_v23 }
 0x1a5   : > { %v1688_v58 = vadd.f32 %v3956_v39, %v1583_v47  ;;  %v1586_v59 = vadd.f32 %v1585_v17, %v1056_v35  ;;  %v1954_v54 = vadd.f32 %v3982_v29, %v1883_v19  ;;  %v1884_v5 = vmul.f32 %v3971_v13, %v1813_v1  ;;  %v4031_v24 = vpop.permute.xlu1 %2205  ;;  %v4039_v27 = vpop.permute.xlu0 %2208 }
 0x1a6   : > { %v1754_v21 = vmul.f32 0.01, %v1690_v56  ;;  %v1691_v6 = vadd.f32 %v3956_v39, %v1594_v57  ;;  %v2345_v44 = vsel %vm2281_vm0, %v1956_v18, 0.0  ;;  %v1957_v60 = vadd.f32 %v3982_v29, %v1886_v11 }
 0x1a7   : > { %v1752_v61 = vmul.f32 0.01, %v1688_v58  ;;  %v1689_v37 = vadd.f32 %v3956_v39, %v1586_v59  ;;  %2459 = vadd.xlane.f32.xlu1 %v2345_v44  ;;  %2449 = vadd.xlane.f32.xlu0 %v2340_v49  ;;  %v1955_v62 = vadd.f32 %v3982_v29, %v1884_v5  ;;  %vm2282_vm3 = vcmp.eq.s32.totalorder %v3997_v10, %v3951_v53 }
 0x1a8   : > { %v1818_v25 = vmax.f32 %v1690_v56, %v1754_v21  ;;  %v1755_v40 = vmul.f32 0.01, %v1691_v6  ;;  %vm2285_vm4 = vcmp.eq.s32.totalorder %v3997_v10, %v4009_v38  ;;  %v2343_v30 = vsel %vm2279_vm2, %v1954_v54, 0.0 }
 0x1a9   : > { %v2911_v33 = vpop.f32.mrb[56].mxu1  ;;  %v1816_v36 = vmax.f32 %v1688_v58, %v1752_v61  ;;  %v1753_v28 = vmul.f32 0.01, %v1689_v37  ;;  %v2991_v51 = vpop.f32.mrb[56].mxu0  ;;  %v2346_v4 = vsel %vm2282_vm3, %v1957_v60, 0.0  ;;  %v2344_v8 = vsel %vm2280_vm1, %v1955_v62, 0.0 }
 0x1aa   : > { %v1069_v32 = vpop.f32.mrb[57].mxu1  ;;  %v1819_v48 = vmax.f32 %v1691_v6, %v1755_v40  ;;  %v1607_v42 = vadd.f32 %v2991_v51, %v2911_v33  ;;  %v1598_v0 = vpop.f32.mrb[57].mxu0  ;;  %v1889_v53 = vmul.f32 %v3971_v13, %v1818_v25  ;;  %vm2284_vm5 = vcmp.eq.s32.totalorder %v3997_v10, %v4001_v12 }
 0x1ab   : > { %v2912_v45 = vpop.f32.mrb[58].mxu1  ;;  %v1817_v7 = vmax.f32 %v1689_v37, %v1753_v28  ;;  %v1599_v3 = vadd.f32 %v1598_v0, %v1069_v32  ;;  %v2992_v20 = vpop.f32.mrb[58].mxu0  ;;  %2455 = vadd.xlane.f32.xlu1 %v2343_v30  ;;  %2461 = vadd.xlane.f32.xlu0 %v2346_v4  ;;  %v1887_v9 = vmul.f32 %v3971_v13, %v1816_v36  ;;  %vm2487_vm0 = vcmask 7168  }
 0x1ac   : > { %v1072_v2 = vpop.f32.mrb[59].mxu1  ;;  %v1694_v14 = vadd.f32 %v3956_v39, %v1607_v42  ;;  %v1610_v46 = vadd.f32 %v2992_v20, %v2912_v45  ;;  %v1601_v34 = vpop.f32.mrb[59].mxu0  ;;  %v1960_v22 = vadd.f32 %v3982_v29, %v1889_v53  ;;  %v1890_v26 = vmul.f32 %v3971_v13, %v1819_v48 }
 0x1ad   : > { %v1692_v16 = vadd.f32 %v3956_v39, %v1599_v3  ;;  %v1602_v23 = vadd.f32 %v1601_v34, %v1072_v2  ;;  %v1958_v43 = vadd.f32 %v3982_v29, %v1887_v9  ;;  %v1888_v50 = vmul.f32 %v3971_v13, %v1817_v7  ;;  %v2215_v15 = vpop.permute.xlu0 %2214  ;;  %v4067_v38 = vpop.permute.xlu1 %2211 }
 0x1ae   : > { %v1758_v41 = vmul.f32 0.01, %v1694_v14  ;;  %v1695_v55 = vadd.f32 %v3956_v39, %v1610_v46  ;;  %v2349_v63 = vsel %vm2285_vm4, %v1960_v22, 0.0  ;;  %v1961_v1 = vadd.f32 %v3982_v29, %v1890_v26 }
 0x1af   : > { %v1756_v47 = vmul.f32 0.01, %v1692_v16  ;;  %v1693_v31 = vadd.f32 %v3956_v39, %v1602_v23  ;;  %2467 = vadd.xlane.f32.xlu1 %v2349_v63  ;;  %2457 = vadd.xlane.f32.xlu0 %v2344_v8  ;;  %v1959_v35 = vadd.f32 %v3982_v29, %v1888_v50  ;;  %vm2283_vm6 = vcmp.eq.s32.totalorder %v3997_v10, %v3964_v52 }
 0x1b0   : > { %vm2286_vm7 = vcmp.eq.s32.totalorder %v3997_v10, %v4031_v24  ;;  %v1822_v49 = vmax.f32 %v1694_v14, %v1758_v41  ;;  %v1759_v19 = vmul.f32 0.01, %v1695_v55  ;;  %vm2289_vm8 = vcmp.eq.s32.totalorder %v3997_v10, %v2215_v15 }
 0x1b1   : > { %v2915_v56 = vpop.f32.mrb[60].mxu1  ;;  %v1820_v57 = vmax.f32 %v1692_v16, %v1756_v47  ;;  %v1757_v17 = vmul.f32 0.01, %v1693_v31  ;;  %v2995_v18 = vpop.f32.mrb[60].mxu0  ;;  %v2347_v58 = vsel %vm2283_vm6, %v1958_v43, 0.0  ;;  %v2350_v52 = vsel %vm2286_vm7, %v1961_v1, 0.0 }
 0x1b2   : > { %v1085_v11 = vpop.f32.mrb[61].mxu1  ;;  %v1823_v59 = vmax.f32 %v1695_v55, %v1759_v19  ;;  %v1623_v54 = vadd.f32 %v2995_v18, %v2915_v56  ;;  %v1614_v5 = vpop.f32.mrb[61].mxu0  ;;  %v1893_v6 = vmul.f32 %v3971_v13, %v1822_v49  ;;  %v2348_v37 = vsel %vm2284_vm5, %v1959_v35, 0.0 }
 0x1b3   : > { %v2916_v21 = vpop.f32.mrb[62].mxu1  ;;  %v1821_v44 = vmax.f32 %v1693_v31, %v1757_v17  ;;  %v1615_v60 = vadd.f32 %v1614_v5, %v1085_v11  ;;  %v2996_v24 = vpop.f32.mrb[62].mxu0  ;;  %2463 = vadd.xlane.f32.xlu1 %v2347_v58  ;;  %2469 = vadd.xlane.f32.xlu0 %v2350_v52  ;;  %v1891_v62 = vmul.f32 %v3971_v13, %v1820_v57 }
 0x1b4   : > { %v1088_v61 = vpop.f32.mrb[63].mxu1  ;;  %v1698_v25 = vadd.f32 %v3956_v39, %v1623_v54  ;;  %v1626_v40 = vadd.f32 %v2996_v24, %v2916_v21  ;;  %v1617_v33 = vpop.f32.mrb[63].mxu0  ;;  %v1964_v36 = vadd.f32 %v3982_v29, %v1893_v6  ;;  %v1894_v28 = vmul.f32 %v3971_v13, %v1823_v59 }
 0x1b5   : > { %v1696_v51 = vadd.f32 %v3956_v39, %v1615_v60  ;;  %v1618_v32 = vadd.f32 %v1617_v33, %v1088_v61  ;;  %v1962_v30 = vadd.f32 %v3982_v29, %v1891_v62  ;;  %v1892_v48 = vmul.f32 %v3971_v13, %v1821_v44  ;;  %v2218_v42 = vpop.permute.xlu1 %2217  ;;  %v2221_v2 = vpop.permute.xlu0 %2220 }
 0x1b6   : > { %v1762_v12 = vmul.f32 0.01, %v1698_v25  ;;  %v1699_v0 = vadd.f32 %v3956_v39, %v1626_v40  ;;  %v2353_v45 = vsel %vm2289_vm8, %v1964_v36, 0.0  ;;  %v1965_v4 = vadd.f32 %v3982_v29, %v1894_v28 }
 0x1b7   : > { %v1760_v53 = vmul.f32 0.01, %v1696_v51  ;;  %v1697_v7 = vadd.f32 %v3956_v39, %v1618_v32  ;;  %2475 = vadd.xlane.f32.xlu1 %v2353_v45  ;;  %2465 = vadd.xlane.f32.xlu0 %v2348_v37  ;;  %vm2287_vm9 = vcmp.eq.s32.totalorder %v3997_v10, %v4039_v27  ;;  %vm2290_vm10 = vcmp.eq.s32.totalorder %v3997_v10, %v2218_v42 }
 0x1b8   : > { %v1826_v3 = vmax.f32 %v1698_v25, %v1762_v12  ;;  %v1763_v20 = vmul.f32 0.01, %v1699_v0  ;;  %v2351_v46 = vsel %vm2287_vm9, %v1962_v30, 0.0  ;;  %v2354_v34 = vsel %vm2290_vm10, %v1965_v4, 0.0 }
 0x1b9   : > { %v1824_v8 = vmax.f32 %v1696_v51, %v1760_v53  ;;  %v1761_v9 = vmul.f32 0.01, %v1697_v7  ;;  %v1963_v22 = vadd.f32 %v3982_v29, %v1892_v48  ;;  %v2224_v23 = vpop.permute.xlu1 %2223  ;;  %vm2288_vm11 = vcmp.eq.s32.totalorder %v3997_v10, %v4067_v38  ;;  %v2227_v41 = vpop.permute.xlu0 %2226 }
 0x1ba   : > { %v1827_v14 = vmax.f32 %v1699_v0, %v1763_v20  ;;  %v1897_v16 = vmul.f32 %v3971_v13, %v1826_v3  ;;  %vm2291_vm12 = vcmp.eq.s32.totalorder %v3997_v10, %v2221_v2  ;;  %vm2292_vm13 = vcmp.eq.s32.totalorder %v3997_v10, %v2224_v23 }
 0x1bb   : > { %v1825_v26 = vmax.f32 %v1697_v7, %v1761_v9  ;;  %2471 = vadd.xlane.f32.xlu1 %v2351_v46  ;;  %2477 = vadd.xlane.f32.xlu0 %v2354_v34  ;;  %v1895_v39 = vmul.f32 %v3971_v13, %v1824_v8  ;;  %v2352_v50 = vsel %vm2288_vm11, %v1963_v22, 0.0  ;;  %vm2293_vm14 = vcmp.eq.s32.totalorder %v3997_v10, %v2227_v41 }
 0x1bc   : > { %v1898_v15 = vmul.f32 %v3971_v13, %v1827_v14  ;;  %v1968_v1 = vadd.f32 %v3982_v29, %v1897_v16 }
 0x1bd   : > { %v1966_v27 = vadd.f32 %v3982_v29, %v1895_v39  ;;  %v1896_v43 = vmul.f32 %v3971_v13, %v1825_v26  ;;  %v2230_v31 = vpop.permute.xlu1 %2229 }
 0x1be   : > { %v1969_v35 = vadd.f32 %v3982_v29, %v1898_v15  ;;  %v2357_v38 = vsel %vm2293_vm14, %v1968_v1, 0.0  ;;  %vm2294_vm15 = vcmp.eq.s32.totalorder %v3997_v10, %v2230_v31 }
 0x1bf   : > { %2473 = vadd.xlane.f32.xlu0 %v2352_v50  ;;  %v2355_v55 = vsel %vm2291_vm12, %v1966_v27, 0.0  ;;  %v1967_v63 = vadd.f32 %v3982_v29, %v1896_v43 }
 0x1c0   : > { %2479 = vadd.xlane.f32.xlu1 %v2355_v55  ;;  %v2358_v13 = vsel %vm2294_vm15, %v1969_v35, 0.0 }
 0x1c1   : > { %v2356_v47 = vsel %vm2292_vm13, %v1967_v63, 0.0 }
 0x1c3   : > { %2481 = vadd.xlane.f32.xlu0 %v2356_v47 }
 0x1c4   : > { %2483 = vadd.xlane.f32.xlu1 %v2357_v38 }
 0x1c7   : > { %2485 = vadd.xlane.f32.xlu0 %v2358_v13 }
 0x1d4   : > { %v2364_v29 = vpop.xlane.xlu0 %2363 }
 0x1d5   : > { %2490 = vst.msk [vmem:[%s4109_s18 + $0x10] sm:$0xff] %vm2487_vm0, %v2364_v29 }
 0x1d7   : > { %v2362_v10 = vpop.xlane.xlu1 %2361 }
 0x1d8   : > { %v2360_v49 = vpop.xlane.xlu0 %2359  ;;  %2489 = vst.msk [vmem:[%s4109_s18 + $0x8] sm:$0xff] %vm2487_vm0, %v2362_v10 }
 0x1d9   : > { %2488 = vst.msk [vmem:[%s4109_s18] sm:$0xff] %vm2487_vm0, %v2360_v49 }
 0x1dc   : > { %v2372_v19 = vpop.xlane.xlu1 %2371  ;;  %v2366_v56 = vpop.xlane.xlu0 %2365 }
 0x1dd   : > { %2494 = vst.msk [vmem:[%s4109_s18 + $0x30] sm:$0xff] %vm2487_vm0, %v2372_v19  ;;  %2491 = vst.msk [vmem:[%s4109_s18 + $0x18] sm:$0xff] %vm2487_vm0, %v2366_v56 }
 0x1e0   : > { %v2368_v57 = vpop.xlane.xlu1 %2367  ;;  %v2374_v17 = vpop.xlane.xlu0 %2373 }
 0x1e1   : > { %2492 = vst.msk [vmem:[%s4109_s18 + $0x20] sm:$0xff] %vm2487_vm0, %v2368_v57  ;;  %2495 = vst.msk [vmem:[%s4109_s18 + $0x38] sm:$0xff] %vm2487_vm0, %v2374_v17 }
 0x1e4   : > { %v2380_v18 = vpop.xlane.xlu1 %2379  ;;  %v2370_v11 = vpop.xlane.xlu0 %2369 }
 0x1e5   : > { %2498 = vst.msk [vmem:[%s4109_s18 + $0x50] sm:$0xff] %vm2487_vm0, %v2380_v18  ;;  %2493 = vst.msk [vmem:[%s4109_s18 + $0x28] sm:$0xff] %vm2487_vm0, %v2370_v11 }
 0x1e8   : > { %v2376_v58 = vpop.xlane.xlu1 %2375  ;;  %v2382_v59 = vpop.xlane.xlu0 %2381 }
 0x1e9   : > { %2496 = vst.msk [vmem:[%s4109_s18 + $0x40] sm:$0xff] %vm2487_vm0, %v2376_v58  ;;  %2499 = vst.msk [vmem:[%s4109_s18 + $0x58] sm:$0xff] %vm2487_vm0, %v2382_v59 }
 0x1ec   : > { %v2388_v54 = vpop.xlane.xlu1 %2387  ;;  %v2378_v5 = vpop.xlane.xlu0 %2377 }
 0x1ed   : > { %2502 = vst.msk [vmem:[%s4109_s18 + $0x70] sm:$0xff] %vm2487_vm0, %v2388_v54  ;;  %2497 = vst.msk [vmem:[%s4109_s18 + $0x48] sm:$0xff] %vm2487_vm0, %v2378_v5 }
 0x1f0   : > { %v2384_v21 = vpop.xlane.xlu1 %2383  ;;  %v2390_v52 = vpop.xlane.xlu0 %2389 }
 0x1f1   : > { %2500 = vst.msk [vmem:[%s4109_s18 + $0x60] sm:$0xff] %vm2487_vm0, %v2384_v21  ;;  %2503 = vst.msk [vmem:[%s4109_s18 + $0x78] sm:$0xff] %vm2487_vm0, %v2390_v52 }
 0x1f4   : > { %v2396_v6 = vpop.xlane.xlu1 %2395  ;;  %v2386_v44 = vpop.xlane.xlu0 %2385 }
 0x1f5   : > { %2506 = vst.msk [vmem:[%s4109_s18 + $0x90] sm:$0xff] %vm2487_vm0, %v2396_v6  ;;  %2501 = vst.msk [vmem:[%s4109_s18 + $0x68] sm:$0xff] %vm2487_vm0, %v2386_v44 }
 0x1f8   : > { %v2392_v60 = vpop.xlane.xlu1 %2391  ;;  %v2398_v24 = vpop.xlane.xlu0 %2397 }
 0x1f9   : > { %2504 = vst.msk [vmem:[%s4109_s18 + $0x80] sm:$0xff] %vm2487_vm0, %v2392_v60  ;;  %2507 = vst.msk [vmem:[%s4109_s18 + $0x98] sm:$0xff] %vm2487_vm0, %v2398_v24 }
 0x1fc   : > { %v2404_v61 = vpop.xlane.xlu1 %2403  ;;  %v2394_v37 = vpop.xlane.xlu0 %2393 }
 0x1fd   : > { %2510 = vst.msk [vmem:[%s4109_s18 + $0xb0] sm:$0xff] %vm2487_vm0, %v2404_v61  ;;  %2505 = vst.msk [vmem:[%s4109_s18 + $0x88] sm:$0xff] %vm2487_vm0, %v2394_v37 }
 0x200   : > { %v2400_v62 = vpop.xlane.xlu1 %2399  ;;  %v2406_v25 = vpop.xlane.xlu0 %2405 }
 0x201   : > { %2508 = vst.msk [vmem:[%s4109_s18 + $0xa0] sm:$0xff] %vm2487_vm0, %v2400_v62  ;;  %2511 = vst.msk [vmem:[%s4109_s18 + $0xb8] sm:$0xff] %vm2487_vm0, %v2406_v25 }
 0x204   : > { %v2412_v40 = vpop.xlane.xlu1 %2411  ;;  %v2402_v33 = vpop.xlane.xlu0 %2401 }
 0x205   : > { %2514 = vst.msk [vmem:[%s4109_s18 + $0xd0] sm:$0xff] %vm2487_vm0, %v2412_v40  ;;  %2509 = vst.msk [vmem:[%s4109_s18 + $0xa8] sm:$0xff] %vm2487_vm0, %v2402_v33 }
 0x208   : > { %v2408_v36 = vpop.xlane.xlu1 %2407  ;;  %v2414_v28 = vpop.xlane.xlu0 %2413 }
 0x209   : > { %2512 = vst.msk [vmem:[%s4109_s18 + $0xc0] sm:$0xff] %vm2487_vm0, %v2408_v36  ;;  %2515 = vst.msk [vmem:[%s4109_s18 + $0xd8] sm:$0xff] %vm2487_vm0, %v2414_v28 }
 0x20c   : > { %v2420_v51 = vpop.xlane.xlu1 %2419  ;;  %v2410_v32 = vpop.xlane.xlu0 %2409 }
 0x20d   : > { %2518 = vst.msk [vmem:[%s4109_s18 + $0xf0] sm:$0xff] %vm2487_vm0, %v2420_v51  ;;  %2513 = vst.msk [vmem:[%s4109_s18 + $0xc8] sm:$0xff] %vm2487_vm0, %v2410_v32 }
 0x210   : > { %v2416_v30 = vpop.xlane.xlu1 %2415  ;;  %v2422_v48 = vpop.xlane.xlu0 %2421 }
 0x211   : > { %2516 = vst.msk [vmem:[%s4109_s18 + $0xe0] sm:$0xff] %vm2487_vm0, %v2416_v30  ;;  %2519 = vst.msk [vmem:[%s4109_s18 + $0xf8] sm:$0xff] %vm2487_vm0, %v2422_v48 }
 0x214   : > { %v2428_v42 = vpop.xlane.xlu1 %2427  ;;  %v2418_v12 = vpop.xlane.xlu0 %2417 }
 0x215   : > { %2522 = vst.msk [vmem:[%s4109_s18 + $0x110] sm:$0xff] %vm2487_vm0, %v2428_v42  ;;  %2517 = vst.msk [vmem:[%s4109_s18 + $0xe8] sm:$0xff] %vm2487_vm0, %v2418_v12 }
 0x218   : > { %v2424_v0 = vpop.xlane.xlu1 %2423  ;;  %v2430_v45 = vpop.xlane.xlu0 %2429 }
 0x219   : > { %2520 = vst.msk [vmem:[%s4109_s18 + $0x100] sm:$0xff] %vm2487_vm0, %v2424_v0  ;;  %2523 = vst.msk [vmem:[%s4109_s18 + $0x118] sm:$0xff] %vm2487_vm0, %v2430_v45 }
 0x21c   : > { %v2436_v4 = vpop.xlane.xlu1 %2435  ;;  %v2426_v53 = vpop.xlane.xlu0 %2425 }
 0x21d   : > { %2526 = vst.msk [vmem:[%s4109_s18 + $0x130] sm:$0xff] %vm2487_vm0, %v2436_v4  ;;  %2521 = vst.msk [vmem:[%s4109_s18 + $0x108] sm:$0xff] %vm2487_vm0, %v2426_v53 }
 0x220   : > { %v2432_v7 = vpop.xlane.xlu1 %2431  ;;  %v2438_v3 = vpop.xlane.xlu0 %2437 }
 0x221   : > { %2524 = vst.msk [vmem:[%s4109_s18 + $0x120] sm:$0xff] %vm2487_vm0, %v2432_v7  ;;  %2527 = vst.msk [vmem:[%s4109_s18 + $0x138] sm:$0xff] %vm2487_vm0, %v2438_v3 }
 0x224   : > { %v2444_v20 = vpop.xlane.xlu1 %2443  ;;  %v2434_v2 = vpop.xlane.xlu0 %2433 }
 0x225   : > { %2530 = vst.msk [vmem:[%s4109_s18 + $0x150] sm:$0xff] %vm2487_vm0, %v2444_v20  ;;  %2525 = vst.msk [vmem:[%s4109_s18 + $0x128] sm:$0xff] %vm2487_vm0, %v2434_v2 }
 0x228   : > { %v2440_v8 = vpop.xlane.xlu1 %2439  ;;  %v2446_v9 = vpop.xlane.xlu0 %2445 }
 0x229   : > { %2528 = vst.msk [vmem:[%s4109_s18 + $0x140] sm:$0xff] %vm2487_vm0, %v2440_v8  ;;  %2531 = vst.msk [vmem:[%s4109_s18 + $0x158] sm:$0xff] %vm2487_vm0, %v2446_v9 }
 0x22c   : > { %v2452_v14 = vpop.xlane.xlu1 %2451  ;;  %v2442_v46 = vpop.xlane.xlu0 %2441 }
 0x22d   : > { %2534 = vst.msk [vmem:[%s4109_s18 + $0x170] sm:$0xff] %vm2487_vm0, %v2452_v14  ;;  %2529 = vst.msk [vmem:[%s4109_s18 + $0x148] sm:$0xff] %vm2487_vm0, %v2442_v46 }
 0x230   : > { %v2448_v34 = vpop.xlane.xlu1 %2447  ;;  %v2454_v22 = vpop.xlane.xlu0 %2453 }
 0x231   : > { %2532 = vst.msk [vmem:[%s4109_s18 + $0x160] sm:$0xff] %vm2487_vm0, %v2448_v34  ;;  %2535 = vst.msk [vmem:[%s4109_s18 + $0x178] sm:$0xff] %vm2487_vm0, %v2454_v22 }
 0x234   : > { %v2460_v26 = vpop.xlane.xlu1 %2459  ;;  %v2450_v39 = vpop.xlane.xlu0 %2449 }
 0x235   : > { %2538 = vst.msk [vmem:[%s4109_s18 + $0x190] sm:$0xff] %vm2487_vm0, %v2460_v26  ;;  %2533 = vst.msk [vmem:[%s4109_s18 + $0x168] sm:$0xff] %vm2487_vm0, %v2450_v39 }
 0x238   : > { %v2456_v16 = vpop.xlane.xlu1 %2455  ;;  %v2462_v23 = vpop.xlane.xlu0 %2461 }
 0x239   : > { %2536 = vst.msk [vmem:[%s4109_s18 + $0x180] sm:$0xff] %vm2487_vm0, %v2456_v16  ;;  %2539 = vst.msk [vmem:[%s4109_s18 + $0x198] sm:$0xff] %vm2487_vm0, %v2462_v23 }
 0x23c   : > { %v2468_v27 = vpop.xlane.xlu1 %2467  ;;  %v2458_v43 = vpop.xlane.xlu0 %2457 }
 0x23d   : > { %2542 = vst.msk [vmem:[%s4109_s18 + $0x1b0] sm:$0xff] %vm2487_vm0, %v2468_v27  ;;  %2537 = vst.msk [vmem:[%s4109_s18 + $0x188] sm:$0xff] %vm2487_vm0, %v2458_v43 }
 0x240   : > { %v2464_v50 = vpop.xlane.xlu1 %2463  ;;  %v2470_v15 = vpop.xlane.xlu0 %2469 }
 0x241   : > { %2540 = vst.msk [vmem:[%s4109_s18 + $0x1a0] sm:$0xff] %vm2487_vm0, %v2464_v50  ;;  %2543 = vst.msk [vmem:[%s4109_s18 + $0x1b8] sm:$0xff] %vm2487_vm0, %v2470_v15 }
 0x244   : > { %v2476_v41 = vpop.xlane.xlu1 %2475  ;;  %v2466_v55 = vpop.xlane.xlu0 %2465 }
 0x245   : > { %2546 = vst.msk [vmem:[%s4109_s18 + $0x1d0] sm:$0xff] %vm2487_vm0, %v2476_v41  ;;  %2541 = vst.msk [vmem:[%s4109_s18 + $0x1a8] sm:$0xff] %vm2487_vm0, %v2466_v55 }
 0x248   : > { %v2472_v63 = vpop.xlane.xlu1 %2471  ;;  %v2478_v1 = vpop.xlane.xlu0 %2477 }
 0x249   : > { %2544 = vst.msk [vmem:[%s4109_s18 + $0x1c0] sm:$0xff] %vm2487_vm0, %v2472_v63  ;;  %2547 = vst.msk [vmem:[%s4109_s18 + $0x1d8] sm:$0xff] %vm2487_vm0, %v2478_v1 }
 0x24c   : > { %v2474_v47 = vpop.xlane.xlu0 %2473 }
 0x24d   : > { %2545 = vst.msk [vmem:[%s4109_s18 + $0x1c8] sm:$0xff] %vm2487_vm0, %v2474_v47  ;;  %v2480_v31 = vpop.xlane.xlu1 %2479 }
 0x24e   : > { %2548 = vst.msk [vmem:[%s4109_s18 + $0x1e0] sm:$0xff] %vm2487_vm0, %v2480_v31 }
 0x250   : > { %v2482_v35 = vpop.xlane.xlu0 %2481 }
 0x251   : > { %2549 = vst.msk [vmem:[%s4109_s18 + $0x1e8] sm:$0xff] %vm2487_vm0, %v2482_v35  ;;  %v2484_v38 = vpop.xlane.xlu1 %2483 }
 0x252   : > { %2550 = vst.msk [vmem:[%s4109_s18 + $0x1f0] sm:$0xff] %vm2487_vm0, %v2484_v38 }
 0x254   : > { %v2486_v13 = vpop.xlane.xlu0 %2485 }
 0x255   : > { %2551 = vst.msk [vmem:[%s4109_s18 + $0x1f8] sm:$0xff] %vm2487_vm0, %v2486_v13 }
 0x256 PF: > { %s21_s30 = sadd.s32 1, %s3249_s30  }
 0x257   : > { %p18_p7 = scmp.ge.s32.totalorder %s21_s30, 4  }
 0x259   :  { %20 = sbr.rel (!%p18_p7) target bundleno = 2 (0x2), region = 101 }
 0x260   :  { %2574 = vsyncpa [#allocation3], 1 }
 0x261   :  { %2576 = vsyncpa [#allocation3 + $0x1], 1 }
 0x262   :  { %2577 = vsyncpa [#allocation5], 1 }

</bundles_post_ra>
